<compile_context>
chip_gen: v7x
topology: tpu7x:2x2x1
jax: 0.10.0
libtpu: 0.0.40
codegen_flags: <defaults>
</compile_context>

<pallas_src>
import functools
import math

import jax
import jax.numpy as jnp
from jax.experimental import pallas as pl
from jax.experimental.pallas import tpu as pltpu

_BN_EPS = 1e-5


# ---------------------------------------------------------------------------
# Tiling / budget helpers (generation-aware).
# ---------------------------------------------------------------------------
def _vmem_limit_bytes():
    """~75% of physical VMEM, clamped to [32 MiB, 96 MiB]."""
    cap = 128 * 1024 * 1024
    try:
        cap = int(pltpu.get_tpu_info().vmem_capacity_bytes)
    except Exception:
        pass
    return max(min(int(cap * 0.75), 96 * 1024 * 1024), 32 * 1024 * 1024)


def _batch_block(b, l):
    """Batch elements per pass-1 grid step: fill the MXU M dim when L is small."""
    best = 1
    for bb in range(1, b + 1):
        if b % bb == 0 and bb * l <= 1024:
            best = bb
    return best


def _row_tile(n, d, d_ff, vmem_budget):
    """Largest row tile (<=1024) dividing n whose pass-2 working set fits the budget."""
    w_bytes = 2 * 2 * 2 * d * d_ff                    # w1 + w2, bf16, double-buffered
    for t in (1024, 512, 256, 128, 64, 32, 16, 8):
        if n % t:
            continue
        act_bytes = 4 * t * (4 * d + 2 * d_ff)        # x/z (double-buffered) + h/y temps
        if w_bytes + act_bytes <= vmem_budget:
            return t
    return n                                          # whole-array block (full dims are legal)


def _ld_row_tile(rows):
    for t in (2048, 1024, 512, 256, 128, 64, 32, 16, 8):
        if rows >= t and rows % t == 0:
            return t
    return rows


# ---------------------------------------------------------------------------
# Pass 1: batch-blocked self-attention (fused QKV) + residual.
# Emits per-step partial sum / sumsq of the residual stream (norm1 statistics).
# ---------------------------------------------------------------------------
def _attn_res_stats_kernel(write_attn, x_ref, wqkv_ref, bqkv_ref, wo_ref, bo_ref,
                           *out_refs):
    if write_attn:
        xres_ref, attn_ref, ps_ref, pss_ref = out_refs
    else:
        xres_ref, ps_ref, pss_ref = out_refs
        attn_ref = None

    bb, L, D = x_ref.shape
    bf16 = jnp.bfloat16

    x = x_ref[...].astype(jnp.float32)                  # (bb, L, D)
    x2 = x.reshape(bb * L, D)                            # flatten batch into M

    qkv = jnp.dot(x2.astype(bf16), wqkv_ref[...],
                  preferred_element_type=jnp.float32) + bqkv_ref[...]
    q = qkv[:, :D].reshape(bb, L, D)
    k = qkv[:, D:2 * D].reshape(bb, L, D)
    v = qkv[:, 2 * D:].reshape(bb, L, D)

    # NT contraction (no explicit k.T); bf16 operands, f32 accumulation.
    s = jnp.einsum("bld,bmd->blm", q.astype(bf16), k.astype(bf16),
                   preferred_element_type=jnp.float32) * (1.0 / math.sqrt(D))
    s = s - jnp.max(s, axis=-1, keepdims=True)
    p = jnp.exp(s)
    p = p * pl.reciprocal(jnp.sum(p, axis=-1, keepdims=True), approx=True)

    o = jnp.einsum("blm,bmd->bld", p.astype(bf16), v.astype(bf16),
                   preferred_element_type=jnp.float32)
    o = jnp.dot(o.reshape(bb * L, D).astype(bf16), wo_ref[...],
                preferred_element_type=jnp.float32) + bo_ref[...]

    xres = x2 + o                     # x + dropout(attn_out); dropout == identity (eval)
    xres_ref[...] = xres.reshape(bb, L, D).astype(xres_ref.dtype)
    if attn_ref is not None:
        attn_ref[...] = p.astype(attn_ref.dtype)

    ps_ref[...] = jnp.sum(xres, axis=0, keepdims=True)
    pss_ref[...] = jnp.sum(xres * xres, axis=0, keepdims=True)


# ---------------------------------------------------------------------------
# Pass 2: folded norm1 (applied twice, precomputed scale/shift) + FFN + residual.
# Emits per-step partial sum / sumsq of the output (norm2 statistics).
# ---------------------------------------------------------------------------
def _bn_ffn_stats_kernel(x_ref, scale1_ref, shift1_ref, w1_ref, b1_ref, w2_ref, b2_ref,
                         z_ref, ps_ref, pss_ref):
    bf16 = jnp.bfloat16
    x = x_ref[...].astype(jnp.float32)                   # (tr, D)
    x2 = x * scale1_ref[...] + shift1_ref[...]           # BN(BN(x)) folded affine

    h = jnp.dot(x2.astype(bf16), w1_ref[...],
                preferred_element_type=jnp.float32) + b1_ref[...]
    h = jnp.maximum(h, 0.0)                               # ReLU
    y = jnp.dot(h.astype(bf16), w2_ref[...],
                preferred_element_type=jnp.float32) + b2_ref[...]

    z = x2 + y                                            # dropout == identity (eval)
    z_ref[...] = z.astype(z_ref.dtype)
    ps_ref[...] = jnp.sum(z, axis=0, keepdims=True)
    pss_ref[...] = jnp.sum(z * z, axis=0, keepdims=True)


# ---------------------------------------------------------------------------
# Pass 3: norm2 affine apply (scale/shift precomputed in plain JAX).
# ---------------------------------------------------------------------------
def _affine_kernel(z_ref, scale_ref, shift_ref, out_ref):
    z = z_ref[...].astype(jnp.float32)
    out_ref[...] = (z * scale_ref[...] + shift_ref[...]).astype(out_ref.dtype)


# ---------------------------------------------------------------------------
# Full EncoderLayer forward.
# ---------------------------------------------------------------------------
def encoder_layer_forward(x, params, return_attn=True):
    B, L, D = x.shape
    N = B * L
    d_ff = params["w1"].shape[1]
    f32 = jnp.float32
    bf16 = jnp.bfloat16
    vmem_limit = _vmem_limit_bytes()

    # Fused QKV weight/bias; weights cast to bf16 once (halves weight DMA + VMEM).
    wqkv = jnp.concatenate([params["wq"], params["wk"], params["wv"]], axis=1).astype(bf16)
    bqkv = jnp.concatenate([params["bq"], params["bk"], params["bv"]], axis=1).astype(f32)
    wo = params["wo"].astype(bf16)
    w1 = params["w1"].astype(bf16)
    w2 = params["w2"].astype(bf16)

    const2d = lambda shp: pl.BlockSpec(shp, lambda *_: (0, 0))

    # ---- pass 1: attention + residual + norm1 partial statistics -----------
    bb = _batch_block(B, L)
    nb = B // bb

    out_specs1 = [pl.BlockSpec((bb, L, D), lambda i: (i, 0, 0))]
    out_shape1 = [jax.ShapeDtypeStruct((B, L, D), x.dtype)]
    if return_attn:
        out_specs1.append(pl.BlockSpec((bb, L, L), lambda i: (i, 0, 0)))
        out_shape1.append(jax.ShapeDtypeStruct((B, L, L), x.dtype))
    out_specs1 += [pl.BlockSpec((None, 1, D), lambda i: (i, 0, 0)),
                   pl.BlockSpec((None, 1, D), lambda i: (i, 0, 0))]
    out_shape1 += [jax.ShapeDtypeStruct((nb, 1, D), f32),
                   jax.ShapeDtypeStruct((nb, 1, D), f32)]

    res1 = pl.pallas_call(
        functools.partial(_attn_res_stats_kernel, return_attn),
        grid=(nb,),
        in_specs=[pl.BlockSpec((bb, L, D), lambda i: (i, 0, 0)),
                  const2d((D, 3 * D)), const2d((1, 3 * D)),
                  const2d((D, D)), const2d((1, D))],
        out_specs=tuple(out_specs1),
        out_shape=tuple(out_shape1),
        compiler_params=pltpu.CompilerParams(
            dimension_semantics=("parallel",),
            vmem_limit_bytes=vmem_limit),
    )(x, wqkv, bqkv, wo, params["bo"])

    if return_attn:
        x_res, attn, ps1, pss1 = res1
    else:
        x_res, ps1, pss1 = res1
        attn = None

    # ---- norm1 stats + analytic BN(BN(.)) fold, in plain JAX ---------------
    inv_n = 1.0 / float(N)
    mean1 = jnp.sum(ps1, axis=0) * inv_n                                  # (1, D)
    var1 = jnp.maximum(jnp.sum(pss1, axis=0) * inv_n - mean1 * mean1, 0.0)
    g1, be1 = params["g1"], params["be1"]
    r1 = jax.lax.rsqrt(var1 + _BN_EPS)
    v_mid = jnp.maximum((g1 * g1) * var1 * (r1 * r1), 0.0)               # var of BN1 output
    r2 = jax.lax.rsqrt(v_mid + _BN_EPS)
    scale1 = (g1 * g1) * r1 * r2
    shift1 = be1 - mean1 * scale1

    # ---- pass 2: folded norm1 + FFN + residual + norm2 partial statistics --
    xf = x_res.reshape(N, D)
    tr = _row_tile(N, D, d_ff, vmem_limit)
    ns2 = N // tr

    z, ps2, pss2 = pl.pallas_call(
        _bn_ffn_stats_kernel,
        grid=(ns2,),
        in_specs=[pl.BlockSpec((tr, D), lambda i: (i, 0)),
                  const2d((1, D)), const2d((1, D)),
                  const2d((D, d_ff)), const2d((1, d_ff)),
                  const2d((d_ff, D)), const2d((1, D))],
        out_specs=(pl.BlockSpec((tr, D), lambda i: (i, 0)),
                   pl.BlockSpec((None, 1, D), lambda i: (i, 0, 0)),
                   pl.BlockSpec((None, 1, D), lambda i: (i, 0, 0))),
        out_shape=(jax.ShapeDtypeStruct((N, D), x.dtype),
                   jax.ShapeDtypeStruct((ns2, 1, D), f32),
                   jax.ShapeDtypeStruct((ns2, 1, D), f32)),
        compiler_params=pltpu.CompilerParams(
            dimension_semantics=("parallel",),
            vmem_limit_bytes=vmem_limit),
    )(xf, scale1, shift1, w1, params["b1"], w2, params["b2"])

    # ---- norm2 stats in plain JAX -------------------------------------------
    mean2 = jnp.sum(ps2, axis=0) * inv_n
    var2 = jnp.maximum(jnp.sum(pss2, axis=0) * inv_n - mean2 * mean2, 0.0)
    scale2 = params["g2"] * jax.lax.rsqrt(var2 + _BN_EPS)
    shift2 = params["be2"] - mean2 * scale2

    # ---- pass 3: apply norm2 (lane-dense + in-place alias when possible) ----
    cp3 = pltpu.CompilerParams(dimension_semantics=("parallel",),
                               vmem_limit_bytes=vmem_limit)
    lane = 128
    if D < lane and lane % D == 0 and (N * D) % lane == 0:
        rep = lane // D
        rows = (N * D) // lane
        zf = z.reshape(rows, lane)
        sc = jnp.tile(scale2, (1, rep))
        sh = jnp.tile(shift2, (1, rep))
        tr3 = _ld_row_tile(rows)
        out = pl.pallas_call(
            _affine_kernel,
            grid=(rows // tr3,),
            in_specs=[pl.BlockSpec((tr3, lane), lambda i: (i, 0)),
                      const2d((1, lane)), const2d((1, lane))],
            out_specs=pl.BlockSpec((tr3, lane), lambda i: (i, 0)),
            out_shape=jax.ShapeDtypeStruct((rows, lane), x.dtype),
            input_output_aliases={0: 0},
            compiler_params=cp3,
        )(zf, sc, sh)
    else:
        tr3 = _ld_row_tile(N)
        out = pl.pallas_call(
            _affine_kernel,
            grid=(N // tr3,),
            in_specs=[pl.BlockSpec((tr3, D), lambda i: (i, 0)),
                      const2d((1, D)), const2d((1, D))],
            out_specs=pl.BlockSpec((tr3, D), lambda i: (i, 0)),
            out_shape=jax.ShapeDtypeStruct((N, D), x.dtype),
            input_output_aliases={0: 0},
            compiler_params=cp3,
        )(z, scale2, shift2)

    return out.reshape(B, L, D), attn


# ---------------------------------------------------------------------------
# Parameter init (PyTorch-like shapes/layouts; x @ W + b convention).
# ---------------------------------------------------------------------------
def init_params(key, d_model, d_ff):
    ks = jax.random.split(key, 8)
    s_d = 1.0 / math.sqrt(d_model)
    s_f = 1.0 / math.sqrt(d_ff)
    return {
        "wq": jax.random.normal(ks[0], (d_model, d_model), jnp.float32) * s_d,
        "wk": jax.random.normal(ks[1], (d_model, d_model), jnp.float32) * s_d,
        "wv": jax.random.normal(ks[2], (d_model, d_model), jnp.float32) * s_d,
        "wo": jax.random.normal(ks[3], (d_model, d_model), jnp.float32) * s_d,
        "bq": jnp.zeros((1, d_model), jnp.float32),
        "bk": jnp.zeros((1, d_model), jnp.float32),
        "bv": jnp.zeros((1, d_model), jnp.float32),
        "bo": jnp.zeros((1, d_model), jnp.float32),
        # conv1: Conv1d(d_model, d_ff, k=1) == matmul over D
        "w1": jax.random.normal(ks[4], (d_model, d_ff), jnp.float32) * s_d,
        "b1": jax.random.normal(ks[5], (1, d_ff), jnp.float32) * 0.01,
        # conv2: Conv1d(d_ff, d_model, k=1)
        "w2": jax.random.normal(ks[6], (d_ff, d_model), jnp.float32) * s_f,
        "b2": jax.random.normal(ks[7], (1, d_model), jnp.float32) * 0.01,
        # batchnorm affine params
        "g1": jnp.ones((1, d_model), jnp.float32),
        "be1": jnp.zeros((1, d_model), jnp.float32),
        "g2": jnp.ones((1, d_model), jnp.float32),
        "be2": jnp.zeros((1, d_model), jnp.float32),
    }


# ---------------------------------------------------------------------------
# Pure-JAX fp32 reference (unfused, norm1 applied twice) for a sanity check.
# ---------------------------------------------------------------------------
def _reference_forward(x, p):
    hp = jax.lax.Precision.HIGHEST

    def mm(a, b):
        return jnp.matmul(a, b, precision=hp)

    def bn(t, g, b):
        t2 = t.reshape(-1, t.shape[-1])
        mu = jnp.mean(t2, axis=0)
        var = jnp.mean((t2 - mu) ** 2, axis=0)
        return (t - mu) * jax.lax.rsqrt(var + _BN_EPS) * g[0] + b[0]

    q = mm(x, p["wq"]) + p["bq"][0]
    k = mm(x, p["wk"]) + p["bk"][0]
    v = mm(x, p["wv"]) + p["bv"][0]
    s = jnp.einsum("bld,bmd->blm", q, k, precision=hp) / math.sqrt(x.shape[-1])
    a = jax.nn.softmax(s, axis=-1)
    o = mm(jnp.einsum("blm,bmd->bld", a, v, precision=hp), p["wo"]) + p["bo"][0]
    xr = x + o
    x2 = bn(bn(xr, p["g1"], p["be1"]), p["g1"], p["be1"])
    h = jnp.maximum(mm(x2, p["w1"]) + p["b1"][0], 0.0)
    y = mm(h, p["w2"]) + p["b2"][0]
    return bn(x2 + y, p["g2"], p["be2"]), a


if __name__ == "__main__":
    B, L, d_model = 2, 8, 32
    d_ff = 4 * d_model

    key = jax.random.PRNGKey(0)
    k_x, k_p = jax.random.split(key)
    x = jax.random.normal(k_x, (B, L, d_model), jnp.float32)
    params = init_params(k_p, d_model, d_ff)

    out, attn = jax.jit(encoder_layer_forward)(x, params)
    jax.block_until_ready((out, attn))

    assert out.shape == (B, L, d_model)
    assert attn.shape == (B, L, L)
    assert bool(jnp.all(jnp.isfinite(out))) and bool(jnp.all(jnp.isfinite(attn)))

    ref_out, ref_attn = _reference_forward(x, params)
    # bf16 MXU operands (f32 accumulation) + approx reciprocal => ~1% deviation vs fp32 ref.
    assert jnp.allclose(out, ref_out, atol=5e-2, rtol=5e-2), \
        float(jnp.max(jnp.abs(out - ref_out)))
    assert jnp.allclose(attn, ref_attn, atol=5e-2, rtol=5e-2), \
        float(jnp.max(jnp.abs(attn - ref_attn)))

    print("KERNEL_OK")
</pallas_src>

<mosaic_0001>
module attributes {stable_mosaic.version = 11 : i64} {
  func.func @_bn_ffn_stats_kernel(%arg0: i32, %arg1: memref<16x32xf32, #tpu.memory_space<vmem>>, %arg2: memref<1x32xf32, #tpu.memory_space<vmem>>, %arg3: memref<1x32xf32, #tpu.memory_space<vmem>>, %arg4: memref<32x128xbf16, #tpu.memory_space<vmem>>, %arg5: memref<1x128xf32, #tpu.memory_space<vmem>>, %arg6: memref<128x32xbf16, #tpu.memory_space<vmem>>, %arg7: memref<1x32xf32, #tpu.memory_space<vmem>>, %arg8: memref<16x32xf32, #tpu.memory_space<vmem>>, %arg9: memref<1x1x32xf32, #tpu.memory_space<vmem>>, %arg10: memref<1x1x32xf32, #tpu.memory_space<vmem>>) attributes {dimension_semantics = [#tpu.dimension_semantics<parallel>], iteration_bounds = array<i64: 1>, scalar_prefetch = 0 : i64, scratch_operands = 0 : i64, tpu.core_type = #tpu.core_type<tc>, window_params = [{transform_indices = @transform_0, window_bounds = array<i64: 16, 32>}, {pipeline_mode = #tpu.pipeline_mode<synchronous>, transform_indices = @transform_1, window_bounds = array<i64: 1, 32>}, {pipeline_mode = #tpu.pipeline_mode<synchronous>, transform_indices = @transform_2, window_bounds = array<i64: 1, 32>}, {pipeline_mode = #tpu.pipeline_mode<synchronous>, transform_indices = @transform_3, window_bounds = array<i64: 32, 128>}, {pipeline_mode = #tpu.pipeline_mode<synchronous>, transform_indices = @transform_4, window_bounds = array<i64: 1, 128>}, {pipeline_mode = #tpu.pipeline_mode<synchronous>, transform_indices = @transform_5, window_bounds = array<i64: 128, 32>}, {pipeline_mode = #tpu.pipeline_mode<synchronous>, transform_indices = @transform_6, window_bounds = array<i64: 1, 32>}, {transform_indices = @transform_7, window_bounds = array<i64: 16, 32>}, {transform_indices = @transform_8, window_bounds = array<i64: 1, 1, 32>}, {transform_indices = @transform_9, window_bounds = array<i64: 1, 1, 32>}]} {
    %c0 = arith.constant 0 : index
    %c0_0 = arith.constant 0 : index
    %0 = vector.load %arg1[%c0, %c0_0] : memref<16x32xf32, #tpu.memory_space<vmem>>, vector<16x32xf32>
    %c0_1 = arith.constant 0 : index
    %c0_2 = arith.constant 0 : index
    %1 = vector.load %arg2[%c0_1, %c0_2] : memref<1x32xf32, #tpu.memory_space<vmem>>, vector<1x32xf32>
    %2 = vector.broadcast %1 : vector<1x32xf32> to vector<16x32xf32>
    %3 = arith.mulf %0, %2 : vector<16x32xf32>
    %c0_3 = arith.constant 0 : index
    %c0_4 = arith.constant 0 : index
    %4 = vector.load %arg3[%c0_3, %c0_4] : memref<1x32xf32, #tpu.memory_space<vmem>>, vector<1x32xf32>
    %5 = vector.broadcast %4 : vector<1x32xf32> to vector<16x32xf32>
    %6 = arith.addf %3, %5 : vector<16x32xf32>
    %7 = arith.truncf %6 : vector<16x32xf32> to vector<16x32xbf16>
    %c0_5 = arith.constant 0 : index
    %c0_6 = arith.constant 0 : index
    %8 = vector.load %arg4[%c0_5, %c0_6] : memref<32x128xbf16, #tpu.memory_space<vmem>>, vector<32x128xbf16>
    %cst = arith.constant dense<0.000000e+00> : vector<16x128xf32>
    %9 = tpu.matmul %7, %8, %cst {dimension_numbers = #tpu.dot_dimension_numbers<[1], [0], [0], [1], [0, 0, 1, 1], [], []>} : vector<16x32xbf16>, vector<32x128xbf16>, vector<16x128xf32> -> vector<16x128xf32>
    %c0_7 = arith.constant 0 : index
    %c0_8 = arith.constant 0 : index
    %10 = vector.load %arg5[%c0_7, %c0_8] : memref<1x128xf32, #tpu.memory_space<vmem>>, vector<1x128xf32>
    %11 = vector.broadcast %10 : vector<1x128xf32> to vector<16x128xf32>
    %12 = arith.addf %9, %11 : vector<16x128xf32>
    %cst_9 = arith.constant 0.000000e+00 : f32
    %13 = vector.broadcast %cst_9 : f32 to vector<16x128xf32>
    %14 = arith.maximumf %12, %13 : vector<16x128xf32>
    %15 = arith.truncf %14 : vector<16x128xf32> to vector<16x128xbf16>
    %c0_10 = arith.constant 0 : index
    %c0_11 = arith.constant 0 : index
    %16 = vector.load %arg6[%c0_10, %c0_11] : memref<128x32xbf16, #tpu.memory_space<vmem>>, vector<128x32xbf16>
    %cst_12 = arith.constant dense<0.000000e+00> : vector<16x32xf32>
    %17 = tpu.matmul %15, %16, %cst_12 {dimension_numbers = #tpu.dot_dimension_numbers<[1], [0], [0], [1], [0, 0, 1, 1], [], []>} : vector<16x128xbf16>, vector<128x32xbf16>, vector<16x32xf32> -> vector<16x32xf32>
    %c0_13 = arith.constant 0 : index
    %c0_14 = arith.constant 0 : index
    %18 = vector.load %arg7[%c0_13, %c0_14] : memref<1x32xf32, #tpu.memory_space<vmem>>, vector<1x32xf32>
    %19 = vector.broadcast %18 : vector<1x32xf32> to vector<16x32xf32>
    %20 = arith.addf %17, %19 : vector<16x32xf32>
    %21 = arith.addf %6, %20 : vector<16x32xf32>
    %c0_15 = arith.constant 0 : index
    %c0_16 = arith.constant 0 : index
    %22 = vector.load %arg8[%c0_15, %c0_16] : memref<16x32xf32, #tpu.memory_space<vmem>>, vector<16x32xf32>
    tpu.vector_store %arg8[%c0_15, %c0_16], %21 {strides = array<i32>} : memref<16x32xf32, #tpu.memory_space<vmem>>, vector<16x32xf32>,
    %cst_17 = arith.constant dense<0.000000e+00> : vector<32xf32>
    %23 = vector.multi_reduction <add>, %21, %cst_17 [0] : vector<16x32xf32> to vector<32xf32>
    %24 = vector.shape_cast %23 : vector<32xf32> to vector<1x32xf32>
    %c0_18 = arith.constant 0 : index
    %c0_19 = arith.constant 0 : index
    %c0_20 = arith.constant 0 : index
    %25 = vector.load %arg9[%c0_18, %c0_19, %c0_20] : memref<1x1x32xf32, #tpu.memory_space<vmem>>, vector<1x1x32xf32>
    %26 = vector.shape_cast %25 : vector<1x1x32xf32> to vector<1x32xf32>
    %27 = vector.shape_cast %24 : vector<1x32xf32> to vector<1x1x32xf32>
    tpu.vector_store %arg9[%c0_18, %c0_19, %c0_20], %27 {strides = array<i32>} : memref<1x1x32xf32, #tpu.memory_space<vmem>>, vector<1x1x32xf32>,
    %28 = arith.mulf %21, %21 : vector<16x32xf32>
    %cst_21 = arith.constant dense<0.000000e+00> : vector<32xf32>
    %29 = vector.multi_reduction <add>, %28, %cst_21 [0] : vector<16x32xf32> to vector<32xf32>
    %30 = vector.shape_cast %29 : vector<32xf32> to vector<1x32xf32>
    %c0_22 = arith.constant 0 : index
    %c0_23 = arith.constant 0 : index
    %c0_24 = arith.constant 0 : index
    %31 = vector.load %arg10[%c0_22, %c0_23, %c0_24] : memref<1x1x32xf32, #tpu.memory_space<vmem>>, vector<1x1x32xf32>
    %32 = vector.shape_cast %31 : vector<1x1x32xf32> to vector<1x32xf32>
    %33 = vector.shape_cast %30 : vector<1x32xf32> to vector<1x1x32xf32>
    tpu.vector_store %arg10[%c0_22, %c0_23, %c0_24], %33 {strides = array<i32>} : memref<1x1x32xf32, #tpu.memory_space<vmem>>, vector<1x1x32xf32>,
    return
  }
  func.func @transform_0(%arg0: i32) -> (i32, i32) {
    %c0_i32 = arith.constant 0 : i32
    %c0_i32_0 = arith.constant 0 : i32
    return %arg0, %c0_i32 : i32, i32
  }
  func.func @transform_1(%arg0: i32) -> (i32, i32) {
    %c0_i32 = arith.constant 0 : i32
    %c0_i32_0 = arith.constant 0 : i32
    %c0_i32_1 = arith.constant 0 : i32
    return %c0_i32, %c0_i32_0 : i32, i32
  }
  func.func @transform_2(%arg0: i32) -> (i32, i32) {
    %c0_i32 = arith.constant 0 : i32
    %c0_i32_0 = arith.constant 0 : i32
    %c0_i32_1 = arith.constant 0 : i32
    return %c0_i32, %c0_i32_0 : i32, i32
  }
  func.func @transform_3(%arg0: i32) -> (i32, i32) {
    %c0_i32 = arith.constant 0 : i32
    %c0_i32_0 = arith.constant 0 : i32
    %c0_i32_1 = arith.constant 0 : i32
    return %c0_i32, %c0_i32_0 : i32, i32
  }
  func.func @transform_4(%arg0: i32) -> (i32, i32) {
    %c0_i32 = arith.constant 0 : i32
    %c0_i32_0 = arith.constant 0 : i32
    %c0_i32_1 = arith.constant 0 : i32
    return %c0_i32, %c0_i32_0 : i32, i32
  }
  func.func @transform_5(%arg0: i32) -> (i32, i32) {
    %c0_i32 = arith.constant 0 : i32
    %c0_i32_0 = arith.constant 0 : i32
    %c0_i32_1 = arith.constant 0 : i32
    return %c0_i32, %c0_i32_0 : i32, i32
  }
  func.func @transform_6(%arg0: i32) -> (i32, i32) {
    %c0_i32 = arith.constant 0 : i32
    %c0_i32_0 = arith.constant 0 : i32
    %c0_i32_1 = arith.constant 0 : i32
    return %c0_i32, %c0_i32_0 : i32, i32
  }
  func.func @transform_7(%arg0: i32) -> (i32, i32) {
    %c0_i32 = arith.constant 0 : i32
    %c0_i32_0 = arith.constant 0 : i32
    return %arg0, %c0_i32 : i32, i32
  }
  func.func @transform_8(%arg0: i32) -> (i32, i32, i32) {
    %c0_i32 = arith.constant 0 : i32
    %c0_i32_0 = arith.constant 0 : i32
    %c0_i32_1 = arith.constant 0 : i32
    return %arg0, %c0_i32, %c0_i32_0 : i32, i32, i32
  }
  func.func @transform_9(%arg0: i32) -> (i32, i32, i32) {
    %c0_i32 = arith.constant 0 : i32
    %c0_i32_0 = arith.constant 0 : i32
    %c0_i32_1 = arith.constant 0 : i32
    return %arg0, %c0_i32, %c0_i32_0 : i32, i32, i32
  }
}

module attributes {stable_mosaic.version = 11 : i64} {
  func.func @_attn_res_stats_kernel(%arg0: i32, %arg1: memref<2x8x32xf32, #tpu.memory_space<vmem>>, %arg2: memref<32x96xbf16, #tpu.memory_space<vmem>>, %arg3: memref<1x96xf32, #tpu.memory_space<vmem>>, %arg4: memref<32x32xbf16, #tpu.memory_space<vmem>>, %arg5: memref<1x32xf32, #tpu.memory_space<vmem>>, %arg6: memref<2x8x32xf32, #tpu.memory_space<vmem>>, %arg7: memref<2x8x8xf32, #tpu.memory_space<vmem>>, %arg8: memref<1x1x32xf32, #tpu.memory_space<vmem>>, %arg9: memref<1x1x32xf32, #tpu.memory_space<vmem>>) attributes {dimension_semantics = [#tpu.dimension_semantics<parallel>], iteration_bounds = array<i64: 1>, scalar_prefetch = 0 : i64, scratch_operands = 0 : i64, tpu.core_type = #tpu.core_type<tc>, window_params = [{transform_indices = @transform_0, window_bounds = array<i64: 2, 8, 32>}, {pipeline_mode = #tpu.pipeline_mode<synchronous>, transform_indices = @transform_1, window_bounds = array<i64: 32, 96>}, {pipeline_mode = #tpu.pipeline_mode<synchronous>, transform_indices = @transform_2, window_bounds = array<i64: 1, 96>}, {pipeline_mode = #tpu.pipeline_mode<synchronous>, transform_indices = @transform_3, window_bounds = array<i64: 32, 32>}, {pipeline_mode = #tpu.pipeline_mode<synchronous>, transform_indices = @transform_4, window_bounds = array<i64: 1, 32>}, {transform_indices = @transform_5, window_bounds = array<i64: 2, 8, 32>}, {transform_indices = @transform_6, window_bounds = array<i64: 2, 8, 8>}, {transform_indices = @transform_7, window_bounds = array<i64: 1, 1, 32>}, {transform_indices = @transform_8, window_bounds = array<i64: 1, 1, 32>}]} {
    %c0 = arith.constant 0 : index
    %c0_0 = arith.constant 0 : index
    %c0_1 = arith.constant 0 : index
    %0 = vector.load %arg1[%c0, %c0_0, %c0_1] : memref<2x8x32xf32, #tpu.memory_space<vmem>>, vector<2x8x32xf32>
    %1 = vector.shape_cast %0 : vector<2x8x32xf32> to vector<16x32xf32>
    %2 = arith.truncf %1 : vector<16x32xf32> to vector<16x32xbf16>
    %c0_2 = arith.constant 0 : index
    %c0_3 = arith.constant 0 : index
    %3 = vector.load %arg2[%c0_2, %c0_3] : memref<32x96xbf16, #tpu.memory_space<vmem>>, vector<32x96xbf16>
    %cst = arith.constant dense<0.000000e+00> : vector<16x96xf32>
    %4 = tpu.matmul %2, %3, %cst {dimension_numbers = #tpu.dot_dimension_numbers<[1], [0], [0], [1], [0, 0, 1, 1], [], []>} : vector<16x32xbf16>, vector<32x96xbf16>, vector<16x96xf32> -> vector<16x96xf32>
    %c0_4 = arith.constant 0 : index
    %c0_5 = arith.constant 0 : index
    %5 = vector.load %arg3[%c0_4, %c0_5] : memref<1x96xf32, #tpu.memory_space<vmem>>, vector<1x96xf32>
    %6 = vector.broadcast %5 : vector<1x96xf32> to vector<16x96xf32>
    %7 = arith.addf %4, %6 : vector<16x96xf32>
    %8 = vector.extract_strided_slice %7 {offsets = [0, 0], sizes = [16, 32], strides = [1, 1]} : vector<16x96xf32> to vector<16x32xf32>
    %9 = vector.shape_cast %8 : vector<16x32xf32> to vector<2x8x32xf32>
    %10 = vector.extract_strided_slice %7 {offsets = [0, 32], sizes = [16, 32], strides = [1, 1]} : vector<16x96xf32> to vector<16x32xf32>
    %11 = vector.shape_cast %10 : vector<16x32xf32> to vector<2x8x32xf32>
    %12 = vector.extract_strided_slice %7 {offsets = [0, 64], sizes = [16, 32], strides = [1, 1]} : vector<16x96xf32> to vector<16x32xf32>
    %13 = vector.shape_cast %12 : vector<16x32xf32> to vector<2x8x32xf32>
    %14 = arith.truncf %9 : vector<2x8x32xf32> to vector<2x8x32xbf16>
    %15 = arith.truncf %11 : vector<2x8x32xf32> to vector<2x8x32xbf16>
    "tpu.trace_start"() <{level = 10 : i32, message = "bld,bmd->blm"}> : () -> ()
    %cst_6 = arith.constant dense<0.000000e+00> : vector<2x8x8xf32>
    %16 = tpu.matmul %14, %15, %cst_6 {dimension_numbers = #tpu.dot_dimension_numbers<[2], [2], [1], [1], [0, 0, 0, 1, 1, 1], [0], [0]>} : vector<2x8x32xbf16>, vector<2x8x32xbf16>, vector<2x8x8xf32> -> vector<2x8x8xf32>
    "tpu.trace_stop"() : () -> ()
    %cst_7 = arith.constant 0.176776692 : f32
    %17 = vector.broadcast %cst_7 : f32 to vector<2x8x8xf32>
    %18 = arith.mulf %16, %17 : vector<2x8x8xf32>
    %cst_8 = arith.constant dense<0xFF800000> : vector<2x8xf32>
    %19 = vector.multi_reduction <maximumf>, %18, %cst_8 [2] : vector<2x8x8xf32> to vector<2x8xf32>
    %20 = vector.shape_cast %19 : vector<2x8xf32> to vector<2x8x1xf32>
    %21 = vector.broadcast %20 : vector<2x8x1xf32> to vector<2x8x8xf32>
    %22 = arith.subf %18, %21 : vector<2x8x8xf32>
    %23 = math.exp %22 : vector<2x8x8xf32>
    %cst_9 = arith.constant dense<0.000000e+00> : vector<2x8xf32>
    %24 = vector.multi_reduction <add>, %23, %cst_9 [2] : vector<2x8x8xf32> to vector<2x8xf32>
    %25 = vector.shape_cast %24 : vector<2x8xf32> to vector<2x8x1xf32>
    %26 = tpu.reciprocal %25 {approx = true} : vector<2x8x1xf32> -> vector<2x8x1xf32>
    %27 = vector.broadcast %26 : vector<2x8x1xf32> to vector<2x8x8xf32>
    %28 = arith.mulf %23, %27 : vector<2x8x8xf32>
    %29 = arith.truncf %28 : vector<2x8x8xf32> to vector<2x8x8xbf16>
    %30 = arith.truncf %13 : vector<2x8x32xf32> to vector<2x8x32xbf16>
    "tpu.trace_start"() <{level = 10 : i32, message = "blm,bmd->bld"}> : () -> ()
    %cst_10 = arith.constant dense<0.000000e+00> : vector<2x8x32xf32>
    %31 = tpu.matmul %29, %30, %cst_10 {dimension_numbers = #tpu.dot_dimension_numbers<[2], [1], [1], [2], [0, 0, 0, 1, 1, 2], [0], [0]>} : vector<2x8x8xbf16>, vector<2x8x32xbf16>, vector<2x8x32xf32> -> vector<2x8x32xf32>
    "tpu.trace_stop"() : () -> ()
    %32 = vector.shape_cast %31 : vector<2x8x32xf32> to vector<16x32xf32>
    %33 = arith.truncf %32 : vector<16x32xf32> to vector<16x32xbf16>
    %c0_11 = arith.constant 0 : index
    %c0_12 = arith.constant 0 : index
    %34 = vector.load %arg4[%c0_11, %c0_12] : memref<32x32xbf16, #tpu.memory_space<vmem>>, vector<32x32xbf16>
    %cst_13 = arith.constant dense<0.000000e+00> : vector<16x32xf32>
    %35 = tpu.matmul %33, %34, %cst_13 {dimension_numbers = #tpu.dot_dimension_numbers<[1], [0], [0], [1], [0, 0, 1, 1], [], []>} : vector<16x32xbf16>, vector<32x32xbf16>, vector<16x32xf32> -> vector<16x32xf32>
    %c0_14 = arith.constant 0 : index
    %c0_15 = arith.constant 0 : index
    %36 = vector.load %arg5[%c0_14, %c0_15] : memref<1x32xf32, #tpu.memory_space<vmem>>, vector<1x32xf32>
    %37 = vector.broadcast %36 : vector<1x32xf32> to vector<16x32xf32>
    %38 = arith.addf %35, %37 : vector<16x32xf32>
    %39 = arith.addf %1, %38 : vector<16x32xf32>
    %40 = vector.shape_cast %39 : vector<16x32xf32> to vector<2x8x32xf32>
    %c0_16 = arith.constant 0 : index
    %c0_17 = arith.constant 0 : index
    %c0_18 = arith.constant 0 : index
    %41 = vector.load %arg6[%c0_16, %c0_17, %c0_18] : memref<2x8x32xf32, #tpu.memory_space<vmem>>, vector<2x8x32xf32>
    tpu.vector_store %arg6[%c0_16, %c0_17, %c0_18], %40 {strides = array<i32>} : memref<2x8x32xf32, #tpu.memory_space<vmem>>, vector<2x8x32xf32>,
    %c0_19 = arith.constant 0 : index
    %c0_20 = arith.constant 0 : index
    %c0_21 = arith.constant 0 : index
    %42 = vector.load %arg7[%c0_19, %c0_20, %c0_21] : memref<2x8x8xf32, #tpu.memory_space<vmem>>, vector<2x8x8xf32>
    tpu.vector_store %arg7[%c0_19, %c0_20, %c0_21], %28 {strides = array<i32>} : memref<2x8x8xf32, #tpu.memory_space<vmem>>, vector<2x8x8xf32>,
    %cst_22 = arith.constant dense<0.000000e+00> : vector<32xf32>
    %43 = vector.multi_reduction <add>, %39, %cst_22 [0] : vector<16x32xf32> to vector<32xf32>
    %44 = vector.shape_cast %43 : vector<32xf32> to vector<1x32xf32>
    %c0_23 = arith.constant 0 : index
    %c0_24 = arith.constant 0 : index
    %c0_25 = arith.constant 0 : index
    %45 = vector.load %arg8[%c0_23, %c0_24, %c0_25] : memref<1x1x32xf32, #tpu.memory_space<vmem>>, vector<1x1x32xf32>
    %46 = vector.shape_cast %45 : vector<1x1x32xf32> to vector<1x32xf32>
    %47 = vector.shape_cast %44 : vector<1x32xf32> to vector<1x1x32xf32>
    tpu.vector_store %arg8[%c0_23, %c0_24, %c0_25], %47 {strides = array<i32>} : memref<1x1x32xf32, #tpu.memory_space<vmem>>, vector<1x1x32xf32>,
    %48 = arith.mulf %39, %39 : vector<16x32xf32>
    %cst_26 = arith.constant dense<0.000000e+00> : vector<32xf32>
    %49 = vector.multi_reduction <add>, %48, %cst_26 [0] : vector<16x32xf32> to vector<32xf32>
    %50 = vector.shape_cast %49 : vector<32xf32> to vector<1x32xf32>
    %c0_27 = arith.constant 0 : index
    %c0_28 = arith.constant 0 : index
    %c0_29 = arith.constant 0 : index
    %51 = vector.load %arg9[%c0_27, %c0_28, %c0_29] : memref<1x1x32xf32, #tpu.memory_space<vmem>>, vector<1x1x32xf32>
    %52 = vector.shape_cast %51 : vector<1x1x32xf32> to vector<1x32xf32>
    %53 = vector.shape_cast %50 : vector<1x32xf32> to vector<1x1x32xf32>
    tpu.vector_store %arg9[%c0_27, %c0_28, %c0_29], %53 {strides = array<i32>} : memref<1x1x32xf32, #tpu.memory_space<vmem>>, vector<1x1x32xf32>,
    return
  }
  func.func @transform_0(%arg0: i32) -> (i32, i32, i32) {
    %c0_i32 = arith.constant 0 : i32
    %c0_i32_0 = arith.constant 0 : i32
    %c0_i32_1 = arith.constant 0 : i32
    return %arg0, %c0_i32, %c0_i32_0 : i32, i32, i32
  }
  func.func @transform_1(%arg0: i32) -> (i32, i32) {
    %c0_i32 = arith.constant 0 : i32
    %c0_i32_0 = arith.constant 0 : i32
    %c0_i32_1 = arith.constant 0 : i32
    return %c0_i32, %c0_i32_0 : i32, i32
  }
  func.func @transform_2(%arg0: i32) -> (i32, i32) {
    %c0_i32 = arith.constant 0 : i32
    %c0_i32_0 = arith.constant 0 : i32
    %c0_i32_1 = arith.constant 0 : i32
    return %c0_i32, %c0_i32_0 : i32, i32
  }
  func.func @transform_3(%arg0: i32) -> (i32, i32) {
    %c0_i32 = arith.constant 0 : i32
    %c0_i32_0 = arith.constant 0 : i32
    %c0_i32_1 = arith.constant 0 : i32
    return %c0_i32, %c0_i32_0 : i32, i32
  }
  func.func @transform_4(%arg0: i32) -> (i32, i32) {
    %c0_i32 = arith.constant 0 : i32
    %c0_i32_0 = arith.constant 0 : i32
    %c0_i32_1 = arith.constant 0 : i32
    return %c0_i32, %c0_i32_0 : i32, i32
  }
  func.func @transform_5(%arg0: i32) -> (i32, i32, i32) {
    %c0_i32 = arith.constant 0 : i32
    %c0_i32_0 = arith.constant 0 : i32
    %c0_i32_1 = arith.constant 0 : i32
    return %arg0, %c0_i32, %c0_i32_0 : i32, i32, i32
  }
  func.func @transform_6(%arg0: i32) -> (i32, i32, i32) {
    %c0_i32 = arith.constant 0 : i32
    %c0_i32_0 = arith.constant 0 : i32
    %c0_i32_1 = arith.constant 0 : i32
    return %arg0, %c0_i32, %c0_i32_0 : i32, i32, i32
  }
  func.func @transform_7(%arg0: i32) -> (i32, i32, i32) {
    %c0_i32 = arith.constant 0 : i32
    %c0_i32_0 = arith.constant 0 : i32
    %c0_i32_1 = arith.constant 0 : i32
    return %arg0, %c0_i32, %c0_i32_0 : i32, i32, i32
  }
  func.func @transform_8(%arg0: i32) -> (i32, i32, i32) {
    %c0_i32 = arith.constant 0 : i32
    %c0_i32_0 = arith.constant 0 : i32
    %c0_i32_1 = arith.constant 0 : i32
    return %arg0, %c0_i32, %c0_i32_0 : i32, i32, i32
  }
}

module attributes {stable_mosaic.version = 11 : i64} {
  func.func @_affine_kernel(%arg0: i32, %arg1: memref<4x128xf32, #tpu.memory_space<vmem>>, %arg2: memref<1x128xf32, #tpu.memory_space<vmem>>, %arg3: memref<1x128xf32, #tpu.memory_space<vmem>>, %arg4: memref<4x128xf32, #tpu.memory_space<vmem>>) attributes {dimension_semantics = [#tpu.dimension_semantics<parallel>], iteration_bounds = array<i64: 1>, scalar_prefetch = 0 : i64, scratch_operands = 0 : i64, tpu.core_type = #tpu.core_type<tc>, window_params = [{transform_indices = @transform_0, window_bounds = array<i64: 4, 128>}, {pipeline_mode = #tpu.pipeline_mode<synchronous>, transform_indices = @transform_1, window_bounds = array<i64: 1, 128>}, {pipeline_mode = #tpu.pipeline_mode<synchronous>, transform_indices = @transform_2, window_bounds = array<i64: 1, 128>}, {transform_indices = @transform_3, window_bounds = array<i64: 4, 128>}]} {
    %c0 = arith.constant 0 : index
    %c0_0 = arith.constant 0 : index
    %0 = vector.load %arg1[%c0, %c0_0] : memref<4x128xf32, #tpu.memory_space<vmem>>, vector<4x128xf32>
    %c0_1 = arith.constant 0 : index
    %c0_2 = arith.constant 0 : index
    %1 = vector.load %arg2[%c0_1, %c0_2] : memref<1x128xf32, #tpu.memory_space<vmem>>, vector<1x128xf32>
    %2 = vector.broadcast %1 : vector<1x128xf32> to vector<4x128xf32>
    %3 = arith.mulf %0, %2 : vector<4x128xf32>
    %c0_3 = arith.constant 0 : index
    %c0_4 = arith.constant 0 : index
    %4 = vector.load %arg3[%c0_3, %c0_4] : memref<1x128xf32, #tpu.memory_space<vmem>>, vector<1x128xf32>
    %5 = vector.broadcast %4 : vector<1x128xf32> to vector<4x128xf32>
    %6 = arith.addf %3, %5 : vector<4x128xf32>
    %c0_5 = arith.constant 0 : index
    %c0_6 = arith.constant 0 : index
    %7 = vector.load %arg4[%c0_5, %c0_6] : memref<4x128xf32, #tpu.memory_space<vmem>>, vector<4x128xf32>
    tpu.vector_store %arg4[%c0_5, %c0_6], %6 {strides = array<i32>} : memref<4x128xf32, #tpu.memory_space<vmem>>, vector<4x128xf32>,
    return
  }
  func.func @transform_0(%arg0: i32) -> (i32, i32) {
    %c0_i32 = arith.constant 0 : i32
    %c0_i32_0 = arith.constant 0 : i32
    return %arg0, %c0_i32 : i32, i32
  }
  func.func @transform_1(%arg0: i32) -> (i32, i32) {
    %c0_i32 = arith.constant 0 : i32
    %c0_i32_0 = arith.constant 0 : i32
    %c0_i32_1 = arith.constant 0 : i32
    return %c0_i32, %c0_i32_0 : i32, i32
  }
  func.func @transform_2(%arg0: i32) -> (i32, i32) {
    %c0_i32 = arith.constant 0 : i32
    %c0_i32_0 = arith.constant 0 : i32
    %c0_i32_1 = arith.constant 0 : i32
    return %c0_i32, %c0_i32_0 : i32, i32
  }
  func.func @transform_3(%arg0: i32) -> (i32, i32) {
    %c0_i32 = arith.constant 0 : i32
    %c0_i32_0 = arith.constant 0 : i32
    return %arg0, %c0_i32 : i32, i32
  }
}

</mosaic_0001>

<bundles_post_ra>
// kernel: encoder_layer_forward.5
= control target key start
LH: loop header
LB: loop body
LE: loop exit
PB: predicated region body
PF: predicated region fallthrough
CT: control target
= control target key end

     0   :  { %8 = vsyncpa [#allocation3], 0  ;;  %s256_s0 = inlined_call_operand.hbm [shape: f32[4,128], index: 0, kind: input, shape index: {}, may-alias: {0,3}]   ;;  %s257_s1 = inlined_call_operand.hbm [shape: f32[1,128], index: 1, kind: input, shape index: {}]   ;;  %s258_s2 = inlined_call_operand.hbm [shape: f32[1,128], index: 2, kind: input, shape index: {}]   ;;  %s259_s3 = inlined_call_operand.hbm [shape: f32[4,128], index: 3, kind: output, shape index: {}, may-alias: {0,3}]  }
   0x1   :  { %9 = vsyncpa [#allocation6], 0 }
   0x2   :  { %10 = vsyncpa [#allocation4], 0  ;;  %s184_s12 = smov [#allocation5]   ;;  %s185_s14 = smov [#allocation2]  }
   0x3   :  { %s27_s13 = sshll.u32 %s184_s12, 4  ;;  %s17_s15 = sshll.u32 %s185_s14, 4  ;;  %s28_s13 = int_to_ptr.vmem [resolvable:$true] %s27_s13  ;;  %s18_s15 = int_to_ptr.vmem [resolvable:$true] %s17_s15 }
   0x4   :  { %s90_s18 = scalar_lea.hbm %s257_s1, 16 }
   0x5   :  { %p91_p0 = scmp.ne.s32.totalorder %s257_s1, %s90_s18  ;;  %p94_p1 = scmp.lt.u32.totalorder %s90_s18, %s257_s1 }
   0x7   :  { %p96_p2 = pnand %p94_p1, %p91_p0 }
   0x9   :  { %99 = shalt.err (!%p96_p2)
}
   0xa   :  { %s100_s23 = scalar_lea.vmem %s28_s13, 16  ;;  %s104_s24 = scalar_lea.vmem %s28_s13, 32 }
   0xb   :  { %p101_p3 = scmp.ne.s32.totalorder %s28_s13, %s100_s23  ;;  %p105_p4 = scmp.lt.s32.totalorder %s28_s13, %s28_s13 }
   0xc   :  { %p106_p5 = scmp.lt.s32.totalorder %s104_s24, %s100_s23 }
   0xe   :  { %p107_p6 = por %p106_p5, %p105_p4 }
  0x10   :  { %p108_p7 = pnand %p107_p6, %p101_p3 }
  0x12   :  { %111 = shalt.err (!%p108_p7)
}
  0x13   :  { %30 = dma.hbm_to_vmem [thread:$0]  %s257_s1, 16, %s28_s13, [#allocation6]  }
  0x14   :  { %s112_s29 = scalar_lea.hbm %s256_s0, 64 }
  0x15   :  { %p113_p8 = scmp.ne.s32.totalorder %s256_s0, %s112_s29  ;;  %p116_p9 = scmp.lt.u32.totalorder %s112_s29, %s256_s0 }
  0x17   :  { %p118_p10 = pnand %p116_p9, %p113_p8 }
  0x19   :  { %121 = shalt.err (!%p118_p10)
}
  0x1a   :  { %s122_s7 = scalar_lea.vmem %s18_s15, 64  ;;  %p127_p12 = scmp.lt.s32.totalorder %s18_s15, %s18_s15 }
  0x1b   :  { %p123_p11 = scmp.ne.s32.totalorder %s18_s15, %s122_s7  ;;  %p128_p13 = scmp.lt.s32.totalorder %s122_s7, %s122_s7 }
  0x1d   :  { %p129_p0 = por %p128_p13, %p127_p12 }
  0x1f   :  { %p130_p1 = pnand %p129_p0, %p123_p11 }
  0x21   :  { %133 = shalt.err (!%p130_p1)
}
  0x22   :  { %20 = dma.hbm_to_vmem [thread:$0]  %s256_s0, 64, %s18_s15, [#allocation3]  }
  0x23   :  { %s186_s9 = smov [#allocation7]   ;;  %s134_s13 = scalar_lea.hbm %s258_s2, 16 }
  0x24   :  { %s37_s10 = sshll.u32 %s186_s9, 4  ;;  %p135_p2 = scmp.ne.s32.totalorder %s258_s2, %s134_s13  ;;  %s38_s10 = int_to_ptr.vmem [resolvable:$true] %s37_s10 }
  0x25   :  { %p138_p3 = scmp.lt.u32.totalorder %s134_s13, %s258_s2 }
  0x27   :  { %p140_p4 = pnand %p138_p3, %p135_p2 }
  0x29   :  { %143 = shalt.err (!%p140_p4)
}
  0x2a   :  { %s144_s19 = scalar_lea.vmem %s38_s10, 16  ;;  %s148_s0 = scalar_lea.vmem %s38_s10, 32 }
  0x2b   :  { %p145_p5 = scmp.ne.s32.totalorder %s38_s10, %s144_s19  ;;  %p149_p6 = scmp.lt.s32.totalorder %s38_s10, %s38_s10 }
  0x2c   :  { %p150_p7 = scmp.lt.s32.totalorder %s148_s0, %s144_s19 }
  0x2e   :  { %p151_p8 = por %p150_p7, %p149_p6 }
  0x30   :  { %p152_p9 = pnand %p151_p8, %p145_p5 }
  0x32   :  { %155 = shalt.err (!%p152_p9)
}
  0x33   :  { %40 = dma.hbm_to_vmem [thread:$0]  %s258_s2, 16, %s38_s10, [#allocation6]  }
  0x34   :  { %178 = dma.done.wait [#allocation3], 64  }
  0x35   :  { %179 = vsyncadd [#allocation3], 4294967232 }
  0x36   :  { %180 = dma.done.wait [#allocation6], 32  }
  0x37   :  { %181 = vsyncadd [#allocation6], 4294967264  ;;  %s187_s21 = smov [#allocation8]   ;;  %v50_v0 = vld [vmem:[#allocation2] sm:$0xf] }
  0x38   :  { %s74_s22 = sshll.u32 %s187_s21, 4  ;;  %v84_v1 = vld [vmem:[#allocation5] ss:$0 sm:$0xff]  ;;  %v85_v2 = vld [vmem:[#allocation7] ss:$0 sm:$0xff]  ;;  %s75_s22 = int_to_ptr.vmem [resolvable:$true] %s74_s22 }
  0x39   :  { %v58_v3 = vmul.f32 %v84_v1, %v50_v0  ;;  %s156_s23 = scalar_lea.vmem %s75_s22, 64  ;;  %p161_p11 = scmp.lt.s32.totalorder %s75_s22, %s75_s22 }
  0x3a   :  { %p157_p10 = scmp.ne.s32.totalorder %s75_s22, %s156_s23  ;;  %p162_p12 = scmp.lt.s32.totalorder %s156_s23, %s156_s23 }
  0x3b   :  { %v66_v4 = vadd.f32 %v85_v2, %v58_v3 }
  0x3c   :  { %p163_p13 = por %p162_p12, %p161_p11 }
  0x3d   :  { %67 = vst [vmem:[#allocation8] sm:$0xf] %v66_v4 }
  0x3e   :  { %p164_p0 = pnand %p163_p13, %p157_p10 }
  0x40   :  { %167 = shalt.err (!%p164_p0)
}
  0x41   :  { %s168_s25 = scalar_lea.hbm %s259_s3, 64 }
  0x42   :  { %p169_p1 = scmp.ne.s32.totalorder %s259_s3, %s168_s25  ;;  %p172_p2 = scmp.lt.u32.totalorder %s168_s25, %s259_s3 }
  0x44   :  { %p174_p3 = pnand %p172_p2, %p169_p1 }
  0x46   :  { %177 = shalt.err (!%p174_p3)
}
  0x47   :  { %77 = dma.vmem_to_hbm [thread:$0]  %s75_s22, 64, %s259_s3, [#allocation4]  }
  0x48   :  { %182 = dma.done.wait [#allocation4], 64  }
  0x49   :  { %183 = vsyncadd [#allocation4], 4294967232 }
  0x4a   :  { %81 = vsyncpa [#allocation3], 1 }
  0x4b   :  { %82 = vsyncpa [#allocation6], 1 }
  0x4c   :  { %83 = vsyncpa [#allocation4], 1 }

// kernel: encoder_layer_forward.4
= control target key start
LH: loop header
LB: loop body
LE: loop exit
PB: predicated region body
PF: predicated region fallthrough
CT: control target
= control target key end

     0   :  { %15 = vsyncpa [#allocation3], 0  ;;  %s933_s0 = inlined_call_operand.hbm [shape: f32[16,32], index: 0, kind: input, shape index: {}]   ;;  %s934_s1 = inlined_call_operand.hbm [shape: f32[1,32], index: 1, kind: input, shape index: {}]   ;;  %s935_s2 = inlined_call_operand.hbm [shape: f32[1,32], index: 2, kind: input, shape index: {}]   ;;  %s936_s3 = inlined_call_operand.hbm [shape: bf16[32,128], index: 3, kind: input, shape index: {}]   ;;  %s937_s4 = inlined_call_operand.hbm [shape: f32[1,128], index: 4, kind: input, shape index: {}]   ;;  %s938_s5 = inlined_call_operand.hbm [shape: bf16[128,32], index: 5, kind: input, shape index: {}]   ;;  %s939_s6 = inlined_call_operand.hbm [shape: f32[1,32], index: 6, kind: input, shape index: {}]   ;;  %s940_s7 = inlined_call_operand.hbm [shape: f32[16,32], index: 7, kind: output, shape index: {0}]   ;;  %s941_s8 = inlined_call_operand.hbm [shape: f32[1,1,32], index: 8, kind: output, shape index: {1}]   ;;  %s942_s9 = inlined_call_operand.hbm [shape: f32[1,1,32], index: 9, kind: output, shape index: {2}]  }
   0x1   :  { %16 = vsyncpa [#allocation6], 0 }
   0x2   :  { %17 = vsyncpa [#allocation9], 0 }
   0x3   :  { %18 = vsyncpa [#allocation12], 0 }
   0x4   :  { %19 = vsyncpa [#allocation4], 0 }
   0x5   :  { %20 = vsyncpa [#allocation16], 0  ;;  %s710_s30 = smov [#allocation5]   ;;  %s711_s11 = smov [#allocation8]  }
   0x6   :  { %s39_s10 = sshll.u32 %s710_s30, 4  ;;  %s58_s12 = sshll.u32 %s711_s11, 4  ;;  %s40_s10 = int_to_ptr.vmem [resolvable:$true] %s39_s10  ;;  %s776_s12 = int_to_ptr.vmem [resolvable:$true] %s58_s12 }
   0x7   :  { %s478_s15 = scalar_lea.hbm %s934_s1, 16 }
   0x8   :  { %p479_p0 = scmp.ne.s32.totalorder %s934_s1, %s478_s15  ;;  %p482_p1 = scmp.lt.u32.totalorder %s478_s15, %s934_s1 }
   0xa   :  { %p484_p2 = pnand %p482_p1, %p479_p0 }
   0xc   :  { %487 = shalt.err (!%p484_p2)
}
   0xd   :  { %s488_s20 = scalar_lea.vmem %s40_s10, 16  ;;  %s492_s21 = scalar_lea.vmem %s40_s10, 32 }
   0xe   :  { %p489_p3 = scmp.ne.s32.totalorder %s40_s10, %s488_s20  ;;  %p493_p4 = scmp.lt.s32.totalorder %s40_s10, %s40_s10 }
   0xf   :  { %p494_p5 = scmp.lt.s32.totalorder %s492_s21, %s488_s20 }
  0x11   :  { %p495_p6 = por %p494_p5, %p493_p4 }
  0x13   :  { %p496_p7 = pnand %p495_p6, %p489_p3 }
  0x15   :  { %499 = shalt.err (!%p496_p7)
}
  0x16   :  { %42 = dma.hbm_to_vmem [thread:$0]  %s934_s1, 16, %s40_s10, [#allocation6]  }
  0x17   :  { %s500_s26 = scalar_lea.hbm %s936_s3, 256 }
  0x18   :  { %p501_p8 = scmp.ne.s32.totalorder %s936_s3, %s500_s26  ;;  %p504_p9 = scmp.lt.u32.totalorder %s500_s26, %s936_s3 }
  0x1a   :  { %p506_p10 = pnand %p504_p9, %p501_p8 }
  0x1c   :  { %509 = shalt.err (!%p506_p10)
}
  0x1d   :  { %s510_s11 = scalar_lea.vmem %s776_s12, 256  ;;  %p515_p12 = scmp.lt.s32.totalorder %s776_s12, %s776_s12 }
  0x1e   :  { %p511_p11 = scmp.ne.s32.totalorder %s776_s12, %s510_s11  ;;  %p516_p13 = scmp.lt.s32.totalorder %s510_s11, %s510_s11 }
  0x20   :  { %p517_p0 = por %p516_p13, %p515_p12 }
  0x22   :  { %p518_p1 = pnand %p517_p0, %p511_p11 }
  0x24   :  { %521 = shalt.err (!%p518_p1)
}
  0x25   :  { %s712_s1 = smov 64   ;;  %s713_s10 = smov 4  }
  0x26   :  { %64 = dma.hbm_to_vmem [thread:$0]  %s936_s3, 256, %s776_s12, [#allocation9], %s712_s1, %s712_s1, %s713_s10  }
  0x27   :  { %s714_s15 = smov [#allocation11]   ;;  %s715_s17 = smov [#allocation2]  }
  0x28   :  { %s80_s16 = sshll.u32 %s714_s15, 4  ;;  %s26_s18 = sshll.u32 %s715_s17, 4  ;;  %s81_s16 = int_to_ptr.vmem [resolvable:$true] %s80_s16  ;;  %s807_s18 = int_to_ptr.vmem [resolvable:$true] %s26_s18 }
  0x29   :  { %s522_s21 = scalar_lea.hbm %s938_s5, 1024 }
  0x2a   :  { %p523_p2 = scmp.ne.s32.totalorder %s938_s5, %s522_s21  ;;  %p526_p3 = scmp.lt.u32.totalorder %s522_s21, %s938_s5 }
  0x2c   :  { %p528_p4 = pnand %p526_p3, %p523_p2 }
  0x2e   :  { %531 = shalt.err (!%p528_p4)
}
  0x2f   :  { %s532_s3 = scalar_lea.vmem %s81_s16, 1024  ;;  %p537_p6 = scmp.lt.s32.totalorder %s81_s16, %s81_s16 }
  0x30   :  { %p533_p5 = scmp.ne.s32.totalorder %s81_s16, %s532_s3  ;;  %p538_p7 = scmp.lt.s32.totalorder %s532_s3, %s532_s3 }
  0x32   :  { %p539_p8 = por %p538_p7, %p537_p6 }
  0x34   :  { %p540_p9 = pnand %p539_p8, %p533_p5 }
  0x36   :  { %543 = shalt.err (!%p540_p9)
}
  0x37   :  { %86 = dma.hbm_to_vmem [thread:$0]  %s938_s5, 1024, %s81_s16, [#allocation12], %s712_s1, %s712_s1, %s713_s10  }
  0x38   :  { %s544_s29 = scalar_lea.hbm %s933_s0, 256 }
  0x39   :  { %p545_p10 = scmp.ne.s32.totalorder %s933_s0, %s544_s29  ;;  %p548_p11 = scmp.lt.u32.totalorder %s544_s29, %s933_s0 }
  0x3b   :  { %p550_p12 = pnand %p548_p11, %p545_p10 }
  0x3d   :  { %553 = shalt.err (!%p550_p12)
}
  0x3e   :  { %s554_s15 = scalar_lea.vmem %s807_s18, 256  ;;  %p559_p0 = scmp.lt.s32.totalorder %s807_s18, %s807_s18 }
  0x3f   :  { %p555_p13 = scmp.ne.s32.totalorder %s807_s18, %s554_s15  ;;  %p560_p1 = scmp.lt.s32.totalorder %s554_s15, %s554_s15 }
  0x41   :  { %p561_p2 = por %p560_p1, %p559_p0 }
  0x43   :  { %p562_p3 = pnand %p561_p2, %p555_p13 }
  0x45   :  { %565 = shalt.err (!%p562_p3)
}
  0x46   :  { %s716_s5 = smov 128   ;;  %s717_s1 = smov 8  }
  0x47   :  { %32 = dma.hbm_to_vmem [thread:$0]  %s933_s0, 256, %s807_s18, [#allocation3], %s716_s5, %s716_s5, %s717_s1  }
  0x48   :  { %s718_s17 = smov [#allocation7]   ;;  %s719_s20 = smov [#allocation10]  }
  0x49   :  { %s49_s19 = sshll.u32 %s718_s17, 4  ;;  %s71_s21 = sshll.u32 %s719_s20, 4  ;;  %s50_s19 = int_to_ptr.vmem [resolvable:$true] %s49_s19  ;;  %s72_s21 = int_to_ptr.vmem [resolvable:$true] %s71_s21 }
  0x4a   :  { %s566_s24 = scalar_lea.hbm %s935_s2, 16 }
  0x4b   :  { %p567_p4 = scmp.ne.s32.totalorder %s935_s2, %s566_s24  ;;  %p570_p5 = scmp.lt.u32.totalorder %s566_s24, %s935_s2 }
  0x4d   :  { %p572_p6 = pnand %p570_p5, %p567_p4 }
  0x4f   :  { %575 = shalt.err (!%p572_p6)
}
  0x50   :  { %s576_s0 = scalar_lea.vmem %s50_s19, 16  ;;  %s580_s18 = scalar_lea.vmem %s50_s19, 32 }
  0x51   :  { %p577_p7 = scmp.ne.s32.totalorder %s50_s19, %s576_s0  ;;  %p581_p8 = scmp.lt.s32.totalorder %s50_s19, %s50_s19 }
  0x52   :  { %p582_p9 = scmp.lt.s32.totalorder %s580_s18, %s576_s0 }
  0x54   :  { %p583_p10 = por %p582_p9, %p581_p8 }
  0x56   :  { %p584_p11 = pnand %p583_p10, %p577_p7 }
  0x58   :  { %587 = shalt.err (!%p584_p11)
}
  0x59   :  { %52 = dma.hbm_to_vmem [thread:$0]  %s935_s2, 16, %s50_s19, [#allocation6]  }
  0x5a   :  { %s588_s11 = scalar_lea.hbm %s937_s4, 16 }
  0x5b   :  { %p589_p12 = scmp.ne.s32.totalorder %s937_s4, %s588_s11  ;;  %p592_p13 = scmp.lt.u32.totalorder %s588_s11, %s937_s4 }
  0x5d   :  { %p594_p0 = pnand %p592_p13, %p589_p12 }
  0x5f   :  { %597 = shalt.err (!%p594_p0)
}
  0x60   :  { %s598_s16 = scalar_lea.vmem %s72_s21, 16  ;;  %s602_s17 = scalar_lea.vmem %s72_s21, 32 }
  0x61   :  { %p599_p1 = scmp.ne.s32.totalorder %s72_s21, %s598_s16  ;;  %p603_p2 = scmp.lt.s32.totalorder %s72_s21, %s72_s21 }
  0x62   :  { %p604_p3 = scmp.lt.s32.totalorder %s602_s17, %s598_s16 }
  0x64   :  { %p605_p4 = por %p604_p3, %p603_p2 }
  0x66   :  { %p606_p5 = pnand %p605_p4, %p599_p1 }
  0x68   :  { %609 = shalt.err (!%p606_p5)
}
  0x69   :  { %74 = dma.hbm_to_vmem [thread:$0]  %s937_s4, 16, %s72_s21, [#allocation9]  }
  0x6a   :  { %s720_s20 = smov [#allocation13]   ;;  %s610_s25 = scalar_lea.hbm %s939_s6, 16 }
  0x6b   :  { %s93_s22 = sshll.u32 %s720_s20, 4  ;;  %p611_p6 = scmp.ne.s32.totalorder %s939_s6, %s610_s25  ;;  %s94_s22 = int_to_ptr.vmem [resolvable:$true] %s93_s22 }
  0x6c   :  { %p614_p7 = scmp.lt.u32.totalorder %s610_s25, %s939_s6 }
  0x6e   :  { %p616_p8 = pnand %p614_p7, %p611_p6 }
  0x70   :  { %619 = shalt.err (!%p616_p8)
}
  0x71   :  { %s620_s18 = scalar_lea.vmem %s94_s22, 16  ;;  %s624_s4 = scalar_lea.vmem %s94_s22, 32 }
  0x72   :  { %p621_p9 = scmp.ne.s32.totalorder %s94_s22, %s620_s18  ;;  %p625_p10 = scmp.lt.s32.totalorder %s94_s22, %s94_s22 }
  0x73   :  { %p626_p11 = scmp.lt.s32.totalorder %s624_s4, %s620_s18 }
  0x75   :  { %p627_p12 = por %p626_p11, %p625_p10 }
  0x77   :  { %p628_p13 = pnand %p627_p12, %p621_p9 }
  0x79   :  { %631 = shalt.err (!%p628_p13)
}
  0x7a   :  { %96 = dma.hbm_to_vmem [thread:$0]  %s939_s6, 16, %s94_s22, [#allocation12]  }
  0x7b   :  { %698 = dma.done.wait [#allocation3], 256  }
  0x7c   :  { %699 = vsyncadd [#allocation3], 4294967040 }
  0x7d   :  { %700 = dma.done.wait [#allocation6], 32  }
  0x7e   :  { %701 = vsyncadd [#allocation6], 4294967264 }
  0x7f   :  { %702 = dma.done.wait [#allocation9], 272  }
  0x80   :  { %703 = vsyncadd [#allocation9], 4294967024 }
  0x81   :  { %704 = dma.done.wait [#allocation12], 1040  }
  0x82   :  { %705 = vsyncadd [#allocation12], 4294966256  ;;  %v721_v0 = vmov 0.0   ;;  %vm722_vm0 = vmmov 0   ;;  %v468_v1 = vld [vmem:[#allocation8] sm:$0xff]   ;;  %v469_v2 = vld [vmem:[#allocation8 + $0x8] sm:$0xff]  }
  0x83   :  { %424 = vmatprep.subr.bf16.mxu0 %v721_v0  ;;  %428 = vmatprep.mubr.msk.bf16.mxu0 %vm722_vm0, %v721_v0  ;;  %v119_v3 = vld [vmem:[#allocation2] sm:$0xff]  ;;  %v120_v4 = vld [vmem:[#allocation2 + $0x8] sm:$0xff]  ;;  %v397_v5 = vld [vmem:[#allocation5] ss:$0 sm:$0xff]  ;;  %vm163_vm1 = vcmask 261120   ;;  %s723_s6 = smov [#allocation14]  }
  0x84   :  { %432 = vmatprep.subr.bf16.mxu1 %v721_v0  ;;  %448 = vmatprep.mubr.msk.bf16.mxu1 %vm722_vm0, %v721_v0  ;;  %v128_v6 = vmul.f32 %v397_v5, %v119_v3  ;;  %v129_v7 = vmul.f32 %v397_v5, %v120_v4  ;;  %v398_v8 = vld [vmem:[#allocation7] ss:$0 sm:$0xff]  ;;  %v470_v9 = vld [vmem:[#allocation11] sm:$0xff]   ;;  %v472_v14 = vld [vmem:[#allocation11 + $0x10] sm:$0xff]   ;;  %s355_s28 = sshll.u32 %s723_s6, 4  ;;  %s356_s28 = int_to_ptr.vmem [resolvable:$true] %s355_s28 }
  0x85   :  { %425 = vmatpush3.bf16.msra.mxu0 %v468_v1  ;;  %433 = vmatpush3.bf16.msra.mxu1 %v470_v9  ;;  %v471_v12 = vld [vmem:[#allocation11 + $0x8] sm:$0xff]   ;;  %v473_v15 = vld [vmem:[#allocation11 + $0x18] sm:$0xff]   ;;  %v474_v16 = vld [vmem:[#allocation11 + $0x20] sm:$0xff]   ;;  %s632_s29 = scalar_lea.vmem %s356_s28, 256  ;;  %p637_p1 = scmp.lt.s32.totalorder %s356_s28, %s356_s28 }
  0x86   :  { %426 = vmatprep.subr.bf16.mxu0 %v721_v0  ;;  %v137_v10 = vadd.f32 %v398_v8, %v128_v6  ;;  %v138_v11 = vadd.f32 %v398_v8, %v129_v7  ;;  %434 = vmatprep.subr.bf16.mxu1 %v721_v0  ;;  %v475_v17 = vld [vmem:[#allocation11 + $0x28] sm:$0xff]   ;;  %v476_v18 = vld [vmem:[#allocation11 + $0x30] sm:$0xff]   ;;  %v477_v19 = vld [vmem:[#allocation11 + $0x38] sm:$0xff]   ;;  %p633_p0 = scmp.ne.s32.totalorder %s356_s28, %s632_s29  ;;  %p638_p2 = scmp.lt.s32.totalorder %s632_s29, %s632_s29 }
  0x87   :  { %v399_v20 = vld [vmem:[#allocation10] ss:$0 sm:$0xff]  ;;  %v403_v30 = vld [vmem:[#allocation13] ss:$0 sm:$0xff] }
  0x88   :  { %v139_v13 = vpack.c.bf16 %v138_v11, %v137_v10  ;;  %p639_p3 = por %p638_p2, %p637_p1 }
  0x89   :  { %427 = vmatpush3.bf16.msra.mxu0 %v469_v2  ;;  %435 = vmatpush3.bf16.msra.mxu1 %v471_v12 }
  0x8a   :  { %436 = vmatprep.subr.bf16.mxu1 %v721_v0  ;;  %p640_p4 = pnand %p639_p3, %p633_p0 }
  0x8c   :  { %429 = vmatmul.mubr.msk.bf16.vlgmr.msra.gmra.mrb[0].mxu0 %vm163_vm1, %v139_v13 }
  0x8d   :  { %437 = vmatpush3.bf16.msra.mxu1 %v472_v14 }
  0x8e   :  { %438 = vmatprep.subr.bf16.mxu1 %v721_v0 }
  0x91   :  { %439 = vmatpush3.bf16.msra.mxu1 %v473_v15 }
  0x92   :  { %440 = vmatprep.subr.bf16.mxu1 %v721_v0 }
  0x95   :  { %441 = vmatpush3.bf16.msra.mxu1 %v474_v16 }
  0x96   :  { %442 = vmatprep.subr.bf16.mxu1 %v721_v0 }
  0x99   :  { %443 = vmatpush3.bf16.msra.mxu1 %v475_v17 }
  0x9a   :  { %444 = vmatprep.subr.bf16.mxu1 %v721_v0 }
  0x9d   :  { %445 = vmatpush3.bf16.msra.mxu1 %v476_v18 }
  0x9e   :  { %446 = vmatprep.subr.bf16.mxu1 %v721_v0 }
  0xa1   :  { %447 = vmatpush3.bf16.msra.mxu1 %v477_v19 }
 0x15f   :  { %v201_v21 = vpop.f32.mrb[0].mxu0 }
 0x160   :  { %v202_v22 = vadd.f32 %v399_v20, %v201_v21  ;;  %v430_v23 = vpop.f32.mrb[1].mxu0 }
 0x161   :  { %v204_v24 = vpop.f32.mrb[2].mxu0 }
 0x162   :  { %v205_v25 = vadd.f32 %v399_v20, %v204_v24  ;;  %v431_v26 = vpop.f32.mrb[3].mxu0  ;;  %v208_v27 = vmax.f32 %v202_v22, 0.0 }
 0x164   :  { %v209_v28 = vmax.f32 %v205_v25, 0.0 }
 0x166   :  { %v210_v29 = vpack.c.bf16 %v209_v28, %v208_v27 }
 0x168   :  { %449 = vmatmul.mubr.bf16.vlgmr.msra.gmra.mrb[0].mxu1 %v210_v29 }
 0x23b   :  { %v316_v31 = vpop.f32.mrb[0].mxu1 }
 0x23c   :  { %v317_v32 = vadd.f32 %v403_v30, %v316_v31  ;;  %v450_v33 = vpop.f32.mrb[1].mxu1 }
 0x23d   :  { %v319_v34 = vpop.f32.mrb[2].mxu1 }
 0x23e   :  { %v323_v35 = vadd.f32 %v317_v32, %v137_v10  ;;  %v320_v36 = vadd.f32 %v403_v30, %v319_v34  ;;  %v451_v37 = vpop.f32.mrb[3].mxu1 }
 0x240   :  { %v338_v38 = vmul.f32 %v323_v35, %v323_v35  ;;  %325 = vst.msk [vmem:[#allocation14] sm:$0xff] %vm163_vm1, %v323_v35  ;;  %v324_v39 = vadd.f32 %v320_v36, %v138_v11  ;;  %v327_v40 = vsel %vm163_vm1, %v323_v35, 0.0 }
 0x242   :  { %v328_v41 = vsel %vm163_vm1, %v324_v39, 0.0  ;;  %v339_v42 = vmul.f32 %v324_v39, %v324_v39  ;;  %326 = vst.msk [vmem:[#allocation14 + $0x8] sm:$0xff] %vm163_vm1, %v324_v39 }
 0x243   :  { %v329_v43 = vadd.f32 %v328_v41, %v327_v40 }
 0x244   :  { %643 = shalt.err (!%p640_p4)
}
 0x245   :  { %s644_s13 = scalar_lea.hbm %s940_s7, 256 }
 0x246   :  { %p645_p5 = scmp.ne.s32.totalorder %s940_s7, %s644_s13  ;;  %p648_p6 = scmp.lt.u32.totalorder %s644_s13, %s940_s7 }
 0x248   :  { %p650_p7 = pnand %p648_p6, %p645_p5 }
 0x24a   :  { %653 = shalt.err (!%p650_p7)
}
 0x24b   :  { %361 = dma.vmem_to_hbm [thread:$0]  %s356_s28, 256, %s940_s7, [#allocation4], %s716_s5, %s716_s5, %s717_s1   ;;  %v340_v44 = vsel %vm163_vm1, %v338_v38, 0.0  ;;  %v341_v45 = vsel %vm163_vm1, %v339_v42, 0.0  ;;  %v330_v46 = vrot.slane %v329_v43, 4  ;;  %vm336_vm2 = vcmask 253952  }
 0x24c   :  { %v342_v47 = vadd.f32 %v341_v45, %v340_v44  ;;  %s724_s19 = smov [#allocation15]   ;;  %s725_s22 = smov [#allocation17]  }
 0x24d   :  { %v331_v48 = vadd.f32 %v330_v46, %v329_v43  ;;  %s368_s20 = sshll.u32 %s724_s19, 4  ;;  %s378_s23 = sshll.u32 %s725_s22, 4  ;;  %s369_s20 = int_to_ptr.vmem [resolvable:$true] %s368_s20  ;;  %s900_s23 = int_to_ptr.vmem [resolvable:$true] %s378_s23 }
 0x24e   :  { %v343_v49 = vrot.slane %v342_v47, 4  ;;  %s654_s7 = scalar_lea.vmem %s369_s20, 16  ;;  %s658_s5 = scalar_lea.vmem %s369_s20, 32 }
 0x24f   :  { %v332_v50 = vrot.slane %v331_v48, 2  ;;  %p655_p8 = scmp.ne.s32.totalorder %s369_s20, %s654_s7  ;;  %p659_p9 = scmp.lt.s32.totalorder %s369_s20, %s369_s20 }
 0x250   :  { %v344_v51 = vadd.f32 %v343_v49, %v342_v47  ;;  %p660_p10 = scmp.lt.s32.totalorder %s658_s5, %s654_s7 }
 0x251   :  { %v333_v52 = vadd.f32 %v332_v50, %v331_v48 }
 0x252   :  { %v345_v53 = vrot.slane %v344_v51, 2  ;;  %p661_p11 = por %p660_p10, %p659_p9 }
 0x253   :  { %v334_v54 = vrot.slane %v333_v52, 1 }
 0x254   :  { %v346_v55 = vadd.f32 %v345_v53, %v344_v51  ;;  %p662_p12 = pnand %p661_p11, %p655_p8 }
 0x255   :  { %v335_v56 = vadd.f32 %v334_v54, %v333_v52 }
 0x256   :  { %v347_v57 = vrot.slane %v346_v55, 1 }
 0x257   :  { %337 = vst.msk [vmem:[#allocation15] sm:$0x1] %vm336_vm2, %v335_v56 }
 0x258   :  { %v348_v58 = vadd.f32 %v347_v57, %v346_v55 }
 0x259   :  { %665 = shalt.err (!%p662_p12)
}
 0x25a   :  { %s666_s25 = scalar_lea.hbm %s941_s8, 16 }
 0x25b   :  { %p667_p13 = scmp.ne.s32.totalorder %s941_s8, %s666_s25  ;;  %p670_p0 = scmp.lt.u32.totalorder %s666_s25, %s941_s8 }
 0x25d   :  { %p672_p1 = pnand %p670_p0, %p667_p13 }
 0x25f   :  { %675 = shalt.err (!%p672_p1)
}
 0x260   :  { %371 = dma.vmem_to_hbm [thread:$0]  %s369_s20, 16, %s941_s8, [#allocation16]   ;;  %349 = vst.msk [vmem:[#allocation17] sm:$0x1] %vm336_vm2, %v348_v58 }
 0x261   :  { %s676_s21 = scalar_lea.vmem %s900_s23, 16  ;;  %s680_s27 = scalar_lea.vmem %s900_s23, 32 }
 0x262   :  { %p677_p2 = scmp.ne.s32.totalorder %s900_s23, %s676_s21  ;;  %p681_p3 = scmp.lt.s32.totalorder %s900_s23, %s900_s23 }
 0x263   :  { %p682_p4 = scmp.lt.s32.totalorder %s680_s27, %s676_s21 }
 0x265   :  { %p683_p5 = por %p682_p4, %p681_p3 }
 0x267   :  { %p684_p6 = pnand %p683_p5, %p677_p2 }
 0x269   :  { %687 = shalt.err (!%p684_p6)
}
 0x26a   :  { %s688_s29 = scalar_lea.hbm %s942_s9, 16 }
 0x26b   :  { %p689_p7 = scmp.ne.s32.totalorder %s942_s9, %s688_s29  ;;  %p692_p8 = scmp.lt.u32.totalorder %s688_s29, %s942_s9 }
 0x26d   :  { %p694_p9 = pnand %p692_p8, %p689_p7 }
 0x26f   :  { %697 = shalt.err (!%p694_p9)
}
 0x270   :  { %381 = dma.vmem_to_hbm [thread:$0]  %s900_s23, 16, %s942_s9, [#allocation16]  }
 0x271   :  { %706 = dma.done.wait [#allocation4], 256  }
 0x272   :  { %707 = vsyncadd [#allocation4], 4294967040 }
 0x273   :  { %708 = dma.done.wait [#allocation16], 32  }
 0x274   :  { %709 = vsyncadd [#allocation16], 4294967264 }
 0x275   :  { %391 = vsyncpa [#allocation3], 1 }
 0x276   :  { %392 = vsyncpa [#allocation6], 1 }
 0x277   :  { %393 = vsyncpa [#allocation9], 1 }
 0x278   :  { %394 = vsyncpa [#allocation12], 1 }
 0x279   :  { %395 = vsyncpa [#allocation4], 1 }
 0x27a   :  { %396 = vsyncpa [#allocation16], 1 }

// kernel: encoder_layer_forward.3
= control target key start
LH: loop header
LB: loop body
LE: loop exit
PB: predicated region body
PF: predicated region fallthrough
CT: control target
= control target key end

     0   :  { %14 = vsyncpa [#allocation3], 0  ;;  %s1094_s0 = inlined_call_operand.hbm [shape: f32[2,8,32], index: 0, kind: input, shape index: {}]   ;;  %s1095_s1 = inlined_call_operand.hbm [shape: bf16[32,96], index: 1, kind: input, shape index: {}]   ;;  %s1096_s2 = inlined_call_operand.hbm [shape: f32[1,96], index: 2, kind: input, shape index: {}]   ;;  %s1097_s3 = inlined_call_operand.hbm [shape: bf16[32,32], index: 3, kind: input, shape index: {}]   ;;  %s1098_s4 = inlined_call_operand.hbm [shape: f32[1,32], index: 4, kind: input, shape index: {}]   ;;  %s1099_s5 = inlined_call_operand.hbm [shape: f32[2,8,32], index: 5, kind: output, shape index: {0}]   ;;  %s1100_s6 = inlined_call_operand.hbm [shape: f32[2,8,8], index: 6, kind: output, shape index: {1}]   ;;  %s1101_s7 = inlined_call_operand.hbm [shape: f32[1,1,32], index: 7, kind: output, shape index: {2}]   ;;  %s1102_s8 = inlined_call_operand.hbm [shape: f32[1,1,32], index: 8, kind: output, shape index: {3}]  }
   0x1   :  { %15 = vsyncpa [#allocation6], 0 }
   0x2   :  { %16 = vsyncpa [#allocation9], 0 }
   0x3   :  { %17 = vsyncpa [#allocation4], 0 }
   0x4   :  { %18 = vsyncpa [#allocation13], 0 }
   0x5   :  { %19 = vsyncpa [#allocation16], 0  ;;  %s850_s27 = smov [#allocation5]   ;;  %s640_s9 = scalar_lea.hbm %s1095_s1, 256 }
   0x6   :  { %s37_s28 = sshll.u32 %s850_s27, 4  ;;  %p641_p0 = scmp.ne.s32.totalorder %s1095_s1, %s640_s9  ;;  %s38_s28 = int_to_ptr.vmem [resolvable:$true] %s37_s28 }
   0x7   :  { %p644_p1 = scmp.lt.u32.totalorder %s640_s9, %s1095_s1 }
   0x9   :  { %p646_p2 = pnand %p644_p1, %p641_p0 }
   0xb   :  { %649 = shalt.err (!%p646_p2)
}
   0xc   :  { %s650_s14 = scalar_lea.vmem %s38_s28, 256  ;;  %p655_p4 = scmp.lt.s32.totalorder %s38_s28, %s38_s28 }
   0xd   :  { %p651_p3 = scmp.ne.s32.totalorder %s38_s28, %s650_s14  ;;  %p656_p5 = scmp.lt.s32.totalorder %s650_s14, %s650_s14 }
   0xf   :  { %p657_p6 = por %p656_p5, %p655_p4 }
  0x11   :  { %p658_p7 = pnand %p657_p6, %p651_p3 }
  0x13   :  { %661 = shalt.err (!%p658_p7)
}
  0x14   :  { %s851_s15 = smov 64   ;;  %s852_s16 = smov 4  }
  0x15   :  { %43 = dma.hbm_to_vmem [thread:$0]  %s1095_s1, 256, %s38_s28, [#allocation6], %s851_s15, %s851_s15, %s852_s16  }
  0x16   :  { %s853_s19 = smov [#allocation8]   ;;  %s854_s21 = smov [#allocation2]  }
  0x17   :  { %s59_s20 = sshll.u32 %s853_s19, 4  ;;  %s25_s22 = sshll.u32 %s854_s21, 4  ;;  %s60_s20 = int_to_ptr.vmem [resolvable:$true] %s59_s20  ;;  %s26_s22 = int_to_ptr.vmem [resolvable:$true] %s25_s22 }
  0x18   :  { %s662_s25 = scalar_lea.hbm %s1097_s3, 256 }
  0x19   :  { %p663_p8 = scmp.ne.s32.totalorder %s1097_s3, %s662_s25  ;;  %p666_p9 = scmp.lt.u32.totalorder %s662_s25, %s1097_s3 }
  0x1b   :  { %p668_p10 = pnand %p666_p9, %p663_p8 }
  0x1d   :  { %671 = shalt.err (!%p668_p10)
}
  0x1e   :  { %s672_s1 = scalar_lea.vmem %s60_s20, 256  ;;  %p677_p12 = scmp.lt.s32.totalorder %s60_s20, %s60_s20 }
  0x1f   :  { %p673_p11 = scmp.ne.s32.totalorder %s60_s20, %s672_s1  ;;  %p678_p13 = scmp.lt.s32.totalorder %s672_s1, %s672_s1 }
  0x21   :  { %p679_p0 = por %p678_p13, %p677_p12 }
  0x23   :  { %p680_p1 = pnand %p679_p0, %p673_p11 }
  0x25   :  { %683 = shalt.err (!%p680_p1)
}
  0x26   :  { %65 = dma.hbm_to_vmem [thread:$0]  %s1097_s3, 256, %s60_s20, [#allocation9], %s851_s15, %s851_s15, %s852_s16  }
  0x27   :  { %s684_s12 = scalar_lea.hbm %s1094_s0, 256 }
  0x28   :  { %p685_p2 = scmp.ne.s32.totalorder %s1094_s0, %s684_s12  ;;  %p688_p3 = scmp.lt.u32.totalorder %s684_s12, %s1094_s0 }
  0x2a   :  { %p690_p4 = pnand %p688_p3, %p685_p2 }
  0x2c   :  { %693 = shalt.err (!%p690_p4)
}
  0x2d   :  { %s694_s19 = scalar_lea.vmem %s26_s22, 256  ;;  %p699_p6 = scmp.lt.s32.totalorder %s26_s22, %s26_s22 }
  0x2e   :  { %p695_p5 = scmp.ne.s32.totalorder %s26_s22, %s694_s19  ;;  %p700_p7 = scmp.lt.s32.totalorder %s694_s19, %s694_s19 }
  0x30   :  { %p701_p8 = por %p700_p7, %p699_p6 }
  0x32   :  { %p702_p9 = pnand %p701_p8, %p695_p5 }
  0x34   :  { %705 = shalt.err (!%p702_p9)
}
  0x35   :  { %s855_s3 = smov 128   ;;  %s856_s16 = smov 8  }
  0x36   :  { %31 = dma.hbm_to_vmem [thread:$0]  %s1094_s0, 256, %s26_s22, [#allocation3], %s855_s3, %s855_s3, %s856_s16  }
  0x37   :  { %s857_s23 = smov [#allocation7]   ;;  %s858_s25 = smov [#allocation10]  }
  0x38   :  { %s50_s24 = sshll.u32 %s857_s23, 4  ;;  %s72_s26 = sshll.u32 %s858_s25, 4  ;;  %s51_s24 = int_to_ptr.vmem [resolvable:$true] %s50_s24  ;;  %s73_s26 = int_to_ptr.vmem [resolvable:$true] %s72_s26 }
  0x39   :  { %s706_s30 = scalar_lea.hbm %s1096_s2, 16 }
  0x3a   :  { %p707_p10 = scmp.ne.s32.totalorder %s1096_s2, %s706_s30  ;;  %p710_p11 = scmp.lt.u32.totalorder %s706_s30, %s1096_s2 }
  0x3c   :  { %p712_p12 = pnand %p710_p11, %p707_p10 }
  0x3e   :  { %715 = shalt.err (!%p712_p12)
}
  0x3f   :  { %s716_s0 = scalar_lea.vmem %s51_s24, 16  ;;  %s720_s22 = scalar_lea.vmem %s51_s24, 32 }
  0x40   :  { %p717_p13 = scmp.ne.s32.totalorder %s51_s24, %s716_s0  ;;  %p721_p0 = scmp.lt.s32.totalorder %s51_s24, %s51_s24 }
  0x41   :  { %p722_p1 = scmp.lt.s32.totalorder %s720_s22, %s716_s0 }
  0x43   :  { %p723_p2 = por %p722_p1, %p721_p0 }
  0x45   :  { %p724_p3 = pnand %p723_p2, %p717_p13 }
  0x47   :  { %727 = shalt.err (!%p724_p3)
}
  0x48   :  { %53 = dma.hbm_to_vmem [thread:$0]  %s1096_s2, 16, %s51_s24, [#allocation6]  }
  0x49   :  { %s728_s17 = scalar_lea.hbm %s1098_s4, 16 }
  0x4a   :  { %p729_p4 = scmp.ne.s32.totalorder %s1098_s4, %s728_s17  ;;  %p732_p5 = scmp.lt.u32.totalorder %s728_s17, %s1098_s4 }
  0x4c   :  { %p734_p6 = pnand %p732_p5, %p729_p4 }
  0x4e   :  { %737 = shalt.err (!%p734_p6)
}
  0x4f   :  { %s738_s23 = scalar_lea.vmem %s73_s26, 16  ;;  %s742_s25 = scalar_lea.vmem %s73_s26, 32 }
  0x50   :  { %p739_p7 = scmp.ne.s32.totalorder %s73_s26, %s738_s23  ;;  %p743_p8 = scmp.lt.s32.totalorder %s73_s26, %s73_s26 }
  0x51   :  { %p744_p9 = scmp.lt.s32.totalorder %s742_s25, %s738_s23 }
  0x53   :  { %p745_p10 = por %p744_p9, %p743_p8 }
  0x55   :  { %p746_p11 = pnand %p745_p10, %p739_p7 }
  0x57   :  { %749 = shalt.err (!%p746_p11)
}
  0x58   :  { %75 = dma.hbm_to_vmem [thread:$0]  %s1098_s4, 16, %s73_s26, [#allocation9]  }
  0x59   :  { %838 = dma.done.wait [#allocation3], 256  }
  0x5a   :  { %839 = vsyncadd [#allocation3], 4294967040 }
  0x5b   :  { %840 = dma.done.wait [#allocation6], 272  }
  0x5c   :  { %841 = vsyncadd [#allocation6], 4294967024 }
  0x5d   :  { %842 = dma.done.wait [#allocation9], 272  }
  0x5e   :  { %843 = vsyncadd [#allocation9], 4294967024  ;;  %v859_v0 = vmov 0.0   ;;  %vm860_vm0 = vmmov 0   ;;  %v628_v1 = vld [vmem:[#allocation5] sm:$0xff]   ;;  %v629_v2 = vld [vmem:[#allocation5 + $0x8] sm:$0xff]  }
  0x5f   :  { %572 = vmatprep.subr.bf16.mxu0 %v859_v0  ;;  %576 = vmatprep.mubr.msk.bf16.mxu0 %vm860_vm0, %v859_v0  ;;  %v984_v3 = vld [vmem:[#allocation2] sm:$0xff]  ;;  %v986_v4 = vld [vmem:[#allocation2 + $0x8] sm:$0xff]  ;;  %vm118_vm1 = vcmask 261120   ;;  %s861_s4 = smov 96   ;;  %vm265_vm2 = vcmask 64512   ;;  %vm295_vm3 = vcmask 1043456  }
  0x60   :  { %580 = vmatprep.subr.bf16.mxu1 %v859_v0  ;;  %582 = vmatprep.mubr.msk.bf16.mxu1 %vm860_vm0, %v859_v0  ;;  %v94_v5 = vpack.c.bf16 %v986_v4, %v984_v3  ;;  %v546_v6 = vld [vmem:[#allocation7] ss:$0 sm:$0xff]  ;;  %v630_v53 = vld [vmem:[#allocation8] sm:$0xff]   ;;  %v631_v54 = vld [vmem:[#allocation8 + $0x8] sm:$0xff]  }
  0x61   :  { %573 = vmatpush3.bf16.msra.mxu0 %v628_v1 }
  0x62   :  { %574 = vmatprep.subr.bf16.mxu0 %v859_v0 }
  0x65   :  { %575 = vmatpush3.bf16.msra.mxu0 %v629_v2 }
  0x66   :  { %586 = vmatprep.subr.bf16.mxu0 %v859_v0 }
  0x68   :  { %577 = vmatmul.mubr.msk.bf16.vlgmr.msra.gmra.mrb[0].mxu0 %vm118_vm1, %v94_v5 }
  0x69   :  { %588 = vmatprep.mubr.msk.bf16.mxu0 %vm860_vm0, %v859_v0 }
 0x13b   :  { %v156_v7 = vpop.f32.mrb[0].mxu0 }
 0x13c   :  { %v157_v8 = vadd.f32 %v546_v6, %v156_v7  ;;  %v578_v9 = vpop.f32.mrb[1].mxu0 }
 0x13d   :  { %v159_v10 = vpop.f32.mrb[2].mxu0 }
 0x13e   :  { %v163_v11 = vpack.c.bf16 %v157_v8, %v157_v8  ;;  %v160_v12 = vadd.f32 %v546_v6, %v159_v10  ;;  %v579_v13 = vpop.f32.mrb[3].mxu0 }
 0x140   :  { %166 = vrot.lane.b32.xlu0 %v163_v11, %s861_s4  ;;  %v164_v14 = vpack.c.bf16 %v160_v12, %v160_v12 }
 0x144   :  { %215 = vrot.lane.b32.xlu0 %v164_v14, %s861_s4 }
 0x1b2   :  { %v167_v15 = vpop.permute.xlu0 %166 }
 0x1b3   :  { %v172_v16 = vsel %vm118_vm1, %v167_v15, 0 }
 0x1b4   :  { %581 = vmatpush3.bf16.xpose.msra.mxu1 %v172_v16 }
 0x1b5   :  { %592 = vmatprep.subr.bf16.mxu1 %v859_v0 }
 0x1b6   :  { %v216_v17 = vpop.permute.xlu0 %215 }
 0x1b7   :  { %v221_v18 = vsel %vm118_vm1, %v216_v17, 0 }
 0x1b8   :  { %587 = vmatpush3.bf16.xpose.msra.mxu0 %v221_v18 }
 0x1b9   :  { %598 = vmatprep.subr.bf16.mxu0 %v859_v0 }
 0x1bb   :  { %583 = vmatmul.mubr.msk.bf16.vlgmr.msra.gmra.mrb[0].mxu1 %vm118_vm1, %v163_v11 }
 0x1bc   :  { %594 = vmatprep.mubr.msk.bf16.mxu1 %vm860_vm0, %v859_v0 }
 0x1bf   :  { %589 = vmatmul.mubr.msk.bf16.vlgmr.msra.gmra.mrb[4].mxu0 %vm118_vm1, %v164_v14 }
 0x1c0   :  { %600 = vmatprep.mubr.msk.bf16.mxu0 %vm860_vm0, %v859_v0 }
 0x28e   :  { %v208_v19 = vpop.f32.mrb[0].mxu1 }
 0x28f   :  { %v263_v20 = vmul.f32 0.17677669, %v208_v19  ;;  %v584_v21 = vpop.f32.mrb[1].mxu1 }
 0x290   :  { %v211_v22 = vpop.f32.mrb[2].mxu1 }
 0x291   :  { %v585_v23 = vpop.f32.mrb[3].mxu1  ;;  %v266_v24 = vsel %vm265_vm2, %v263_v20, -inf }
 0x292   :  { %267 = vmax.xlane.f32.xlu1 %v266_v24  ;;  %v257_v25 = vpop.f32.mrb[4].mxu0 }
 0x293   :  { %v264_v26 = vmul.f32 0.17677669, %v257_v25  ;;  %v590_v27 = vpop.f32.mrb[5].mxu0 }
 0x294   :  { %v260_v28 = vpop.f32.mrb[6].mxu0 }
 0x295   :  { %v591_v29 = vpop.f32.mrb[7].mxu0  ;;  %v269_v30 = vsel %vm265_vm2, %v264_v26, -inf }
 0x296   :  { %270 = vmax.xlane.f32.xlu1 %v269_v30 }
 0x2a7   :  { %290 = vrot.lane.b32.xlu1 %v163_v11, %s851_s15 }
 0x31f   :  { %v268_v31 = vpop.xlane.xlu1 %267 }
 0x320   :  { %v272_v32 = vsub.f32 %v263_v20, %v268_v31 }
 0x322   :  { %v274_v33 = vmul.f32 1.442695, %v272_v32 }
 0x323   :  { %v271_v34 = vpop.xlane.xlu1 %270 }
 0x324   :  { %632 = vpow2.f32 %v274_v33  ;;  %v273_v35 = vsub.f32 %v264_v26, %v271_v34 }
 0x326   :  { %v276_v36 = vmul.f32 1.442695, %v273_v35 }
 0x327   :  { %v291_v37 = vpop.permute.xlu1 %290 }
 0x328   :  { %634 = vpow2.f32 %v276_v36  ;;  %v297_v38 = vsel %vm295_vm3, %v291_v37, 0 }
 0x329   :  { %593 = vmatpush3.bf16.msra.mxu1 %v297_v38 }
 0x32a   :  { %604 = vmatprep.subr.bf16.mxu1 %v859_v0 }
 0x32e   :  { %v633_v39 = vpop.eup %632 }
 0x32f   :  { %v278_v40 = vsel %vm265_vm2, %v633_v39, 0.0 }
 0x330   :  { %279 = vadd.xlane.f32.xlu0 %v278_v40 }
 0x332   :  { %v635_v41 = vpop.eup %634 }
 0x333   :  { %v281_v42 = vsel %vm265_vm2, %v635_v41, 0.0 }
 0x334   :  { %282 = vadd.xlane.f32.xlu1 %v281_v42 }
 0x345   :  { %339 = vrot.lane.b32.xlu1 %v164_v14, %s851_s15  ;;  %s862_s15 = smov [#allocation12]  }
 0x346   :  { %s501_s26 = sshll.u32 %s862_s15, 4  ;;  %s502_s26 = int_to_ptr.vmem [resolvable:$true] %s501_s26 }
 0x347   :  { %s750_s27 = scalar_lea.vmem %s502_s26, 256  ;;  %p755_p13 = scmp.lt.s32.totalorder %s502_s26, %s502_s26 }
 0x348   :  { %p751_p12 = scmp.ne.s32.totalorder %s502_s26, %s750_s27  ;;  %p756_p0 = scmp.lt.s32.totalorder %s750_s27, %s750_s27 }
 0x34a   :  { %p757_p1 = por %p756_p0, %p755_p13 }
 0x34c   :  { %p758_p2 = pnand %p757_p1, %p751_p12 }
 0x3bd   :  { %v280_v43 = vpop.xlane.xlu0 %279 }
 0x3be   :  { %636 = vrcp.f32 %v280_v43 }
 0x3c1   :  { %v283_v44 = vpop.xlane.xlu1 %282 }
 0x3c2   :  { %638 = vrcp.f32 %v283_v44 }
 0x3c5   :  { %v340_v45 = vpop.permute.xlu1 %339 }
 0x3c6   :  { %v345_v46 = vsel %vm295_vm3, %v340_v45, 0 }
 0x3c7   :  { %599 = vmatpush3.bf16.msra.mxu0 %v345_v46 }
 0x3c8   :  { %v637_v47 = vpop.eup %636 }
 0x3c9   :  { %v286_v48 = vmul.f32 %v637_v47, %v633_v39 }
 0x3cb   :  { %459 = vst.msk [vmem:[#allocation12] sm:$0xff] %vm265_vm2, %v286_v48  ;;  %v288_v49 = vpack.c.bf16 %v286_v48, %v286_v48 }
 0x3cc   :  { %v639_v50 = vpop.eup %638 }
 0x3cd   :  { %v287_v51 = vmul.f32 %v639_v50, %v635_v41  ;;  %595 = vmatmul.mubr.msk.bf16.vlgmr.msra.gmra.mrb[4].mxu1 %vm265_vm2, %v288_v49 }
 0x3ce   :  { %608 = vmatprep.mubr.msk.bf16.mxu1 %vm860_vm0, %v859_v0  ;;  %605 = vmatpush3.bf16.msra.mxu1 %v630_v53 }
 0x3cf   :  { %460 = vst.msk [vmem:[#allocation12 + $0x8] sm:$0xff] %vm265_vm2, %v287_v51  ;;  %v289_v52 = vpack.c.bf16 %v287_v51, %v287_v51  ;;  %606 = vmatprep.subr.bf16.mxu1 %v859_v0 }
 0x3d1   :  { %601 = vmatmul.mubr.msk.bf16.vlgmr.msra.gmra.mrb[8].mxu0 %vm265_vm2, %v289_v52 }
 0x3d2   :  { %607 = vmatpush3.bf16.msra.mxu1 %v631_v54 }
 0x4a0   :  { %v333_v55 = vpop.f32.mrb[4].mxu1 }
 0x4a1   :  { %v596_v56 = vpop.f32.mrb[5].mxu1 }
 0x4a2   :  { %v336_v57 = vpop.f32.mrb[6].mxu1 }
 0x4a3   :  { %v597_v58 = vpop.f32.mrb[7].mxu1 }
 0x4a4   :  { %v381_v59 = vpop.f32.mrb[8].mxu0 }
 0x4a5   :  { %v387_v60 = vpack.c.bf16 %v381_v59, %v333_v55  ;;  %v602_v61 = vpop.f32.mrb[9].mxu0 }
 0x4a6   :  { %v384_v62 = vpop.f32.mrb[10].mxu0 }
 0x4a7   :  { %v603_v63 = vpop.f32.mrb[11].mxu0  ;;  %609 = vmatmul.mubr.msk.bf16.vlgmr.msra.gmra.mrb[8].mxu1 %vm118_vm1, %v387_v60 }
 0x4a8   :  { %761 = shalt.err (!%p758_p2)
}
 0x4a9   :  { %s762_s1 = scalar_lea.hbm %s1100_s6, 256 }
 0x4aa   :  { %p763_p3 = scmp.ne.s32.totalorder %s1100_s6, %s762_s1  ;;  %p766_p4 = scmp.lt.u32.totalorder %s762_s1, %s1100_s6 }
 0x4ac   :  { %p768_p5 = pnand %p766_p4, %p763_p3 }
 0x4ae   :  { %771 = shalt.err (!%p768_p5)
}
 0x4af   :  { %507 = dma.vmem_to_hbm [thread:$0]  %s502_s26, 256, %s1100_s6, [#allocation13], %s855_s3, %s855_s3, %s856_s16   ;;  %v554_v0 = vld [vmem:[#allocation10] ss:$0 sm:$0xff] }
 0x4b0   :  { %s863_s12 = smov [#allocation11]  }
 0x4b1   :  { %s489_s13 = sshll.u32 %s863_s12, 4  ;;  %s490_s13 = int_to_ptr.vmem [resolvable:$true] %s489_s13 }
 0x4b2   :  { %s772_s6 = scalar_lea.vmem %s490_s13, 256  ;;  %p777_p7 = scmp.lt.s32.totalorder %s490_s13, %s490_s13 }
 0x4b3   :  { %p773_p6 = scmp.ne.s32.totalorder %s490_s13, %s772_s6  ;;  %p778_p8 = scmp.lt.s32.totalorder %s772_s6, %s772_s6 }
 0x4b5   :  { %p779_p9 = por %p778_p8, %p777_p7 }
 0x4b7   :  { %p780_p10 = pnand %p779_p9, %p773_p6 }
 0x57a   :  { %v448_v1 = vpop.f32.mrb[8].mxu1 }
 0x57b   :  { %v449_v2 = vadd.f32 %v554_v0, %v448_v1  ;;  %v610_v5 = vpop.f32.mrb[9].mxu1 }
 0x57c   :  { %v451_v6 = vpop.f32.mrb[10].mxu1 }
 0x57d   :  { %v455_v7 = vadd.f32 %v449_v2, %v984_v3  ;;  %v452_v8 = vadd.f32 %v554_v0, %v451_v6  ;;  %v611_v9 = vpop.f32.mrb[11].mxu1 }
 0x57f   :  { %v472_v10 = vmul.f32 %v455_v7, %v455_v7  ;;  %457 = vst.msk [vmem:[#allocation11] sm:$0xff] %vm118_vm1, %v455_v7  ;;  %v456_v11 = vadd.f32 %v452_v8, %v986_v4  ;;  %v461_v12 = vsel %vm118_vm1, %v455_v7, 0.0 }
 0x581   :  { %v462_v13 = vsel %vm118_vm1, %v456_v11, 0.0  ;;  %v473_v14 = vmul.f32 %v456_v11, %v456_v11  ;;  %458 = vst.msk [vmem:[#allocation11 + $0x8] sm:$0xff] %vm118_vm1, %v456_v11 }
 0x582   :  { %v463_v15 = vadd.f32 %v462_v13, %v461_v12 }
 0x583   :  { %783 = shalt.err (!%p780_p10)
}
 0x584   :  { %s784_s18 = scalar_lea.hbm %s1099_s5, 256 }
 0x585   :  { %p785_p11 = scmp.ne.s32.totalorder %s1099_s5, %s784_s18  ;;  %p788_p12 = scmp.lt.u32.totalorder %s784_s18, %s1099_s5 }
 0x587   :  { %p790_p13 = pnand %p788_p12, %p785_p11 }
 0x589   :  { %793 = shalt.err (!%p790_p13)
}
 0x58a   :  { %495 = dma.vmem_to_hbm [thread:$0]  %s490_s13, 256, %s1099_s5, [#allocation4], %s855_s3, %s855_s3, %s856_s16   ;;  %v474_v3 = vsel %vm118_vm1, %v472_v10, 0.0  ;;  %v475_v4 = vsel %vm118_vm1, %v473_v14, 0.0  ;;  %v464_v16 = vrot.slane %v463_v15, 4  ;;  %vm470_vm4 = vcmask 253952  }
 0x58b   :  { %v476_v17 = vadd.f32 %v475_v4, %v474_v3  ;;  %s864_s24 = smov [#allocation14]   ;;  %s865_s15 = smov [#allocation15]  }
 0x58c   :  { %v465_v18 = vadd.f32 %v464_v16, %v463_v15  ;;  %s514_s4 = sshll.u32 %s864_s24, 4  ;;  %s524_s26 = sshll.u32 %s865_s15, 4  ;;  %s515_s4 = int_to_ptr.vmem [resolvable:$true] %s514_s4  ;;  %s1061_s26 = int_to_ptr.vmem [resolvable:$true] %s524_s26 }
 0x58d   :  { %v477_v19 = vrot.slane %v476_v17, 4  ;;  %s794_s5 = scalar_lea.vmem %s515_s4, 16  ;;  %s798_s3 = scalar_lea.vmem %s515_s4, 32 }
 0x58e   :  { %v466_v20 = vrot.slane %v465_v18, 2  ;;  %p795_p0 = scmp.ne.s32.totalorder %s515_s4, %s794_s5  ;;  %p799_p1 = scmp.lt.s32.totalorder %s515_s4, %s515_s4 }
 0x58f   :  { %v478_v21 = vadd.f32 %v477_v19, %v476_v17  ;;  %p800_p2 = scmp.lt.s32.totalorder %s798_s3, %s794_s5 }
 0x590   :  { %v467_v22 = vadd.f32 %v466_v20, %v465_v18 }
 0x591   :  { %v479_v23 = vrot.slane %v478_v21, 2  ;;  %p801_p3 = por %p800_p2, %p799_p1 }
 0x592   :  { %v468_v24 = vrot.slane %v467_v22, 1 }
 0x593   :  { %v480_v25 = vadd.f32 %v479_v23, %v478_v21  ;;  %p802_p4 = pnand %p801_p3, %p795_p0 }
 0x594   :  { %v469_v26 = vadd.f32 %v468_v24, %v467_v22 }
 0x595   :  { %v481_v27 = vrot.slane %v480_v25, 1 }
 0x596   :  { %471 = vst.msk [vmem:[#allocation14] sm:$0x1] %vm470_vm4, %v469_v26 }
 0x597   :  { %v482_v28 = vadd.f32 %v481_v27, %v480_v25 }
 0x598   :  { %805 = shalt.err (!%p802_p4)
}
 0x599   :  { %s806_s29 = scalar_lea.hbm %s1101_s7, 16 }
 0x59a   :  { %p807_p5 = scmp.ne.s32.totalorder %s1101_s7, %s806_s29  ;;  %p810_p6 = scmp.lt.u32.totalorder %s806_s29, %s1101_s7 }
 0x59c   :  { %p812_p7 = pnand %p810_p6, %p807_p5 }
 0x59e   :  { %815 = shalt.err (!%p812_p7)
}
 0x59f   :  { %517 = dma.vmem_to_hbm [thread:$0]  %s515_s4, 16, %s1101_s7, [#allocation13]   ;;  %483 = vst.msk [vmem:[#allocation15] sm:$0x1] %vm470_vm4, %v482_v28 }
 0x5a0   :  { %s816_s22 = scalar_lea.vmem %s1061_s26, 16  ;;  %s820_s11 = scalar_lea.vmem %s1061_s26, 32 }
 0x5a1   :  { %p817_p8 = scmp.ne.s32.totalorder %s1061_s26, %s816_s22  ;;  %p821_p9 = scmp.lt.s32.totalorder %s1061_s26, %s1061_s26 }
 0x5a2   :  { %p822_p10 = scmp.lt.s32.totalorder %s820_s11, %s816_s22 }
 0x5a4   :  { %p823_p11 = por %p822_p10, %p821_p9 }
 0x5a6   :  { %p824_p12 = pnand %p823_p11, %p817_p8 }
 0x5a8   :  { %827 = shalt.err (!%p824_p12)
}
 0x5a9   :  { %s828_s6 = scalar_lea.hbm %s1102_s8, 16 }
 0x5aa   :  { %p829_p13 = scmp.ne.s32.totalorder %s1102_s8, %s828_s6  ;;  %p832_p0 = scmp.lt.u32.totalorder %s828_s6, %s1102_s8 }
 0x5ac   :  { %p834_p1 = pnand %p832_p0, %p829_p13 }
 0x5ae   :  { %837 = shalt.err (!%p834_p1)
}
 0x5af   :  { %527 = dma.vmem_to_hbm [thread:$0]  %s1061_s26, 16, %s1102_s8, [#allocation16]  }
 0x5b0   :  { %844 = dma.done.wait [#allocation4], 256  }
 0x5b1   :  { %845 = vsyncadd [#allocation4], 4294967040 }
 0x5b2   :  { %846 = dma.done.wait [#allocation13], 272  }
 0x5b3   :  { %847 = vsyncadd [#allocation13], 4294967024 }
 0x5b4   :  { %848 = dma.done.wait [#allocation16], 16  }
 0x5b5   :  { %849 = vsyncadd [#allocation16], 4294967280 }
 0x5b6   :  { %540 = vsyncpa [#allocation3], 1 }
 0x5b7   :  { %541 = vsyncpa [#allocation6], 1 }
 0x5b8   :  { %542 = vsyncpa [#allocation9], 1 }
 0x5b9   :  { %543 = vsyncpa [#allocation4], 1 }
 0x5ba   :  { %544 = vsyncpa [#allocation13], 1 }
 0x5bb   :  { %545 = vsyncpa [#allocation16], 1 }

</bundles_post_ra>
